<compile_context>
chip_gen: v7x
topology: tpu7x:2x2x1
jax: 0.10.0
libtpu: 0.0.40
codegen_flags: <defaults>
</compile_context>

<pallas_src>
import functools
import math

import jax
import jax.numpy as jnp
from jax import lax
from jax.experimental import pallas as pl
from jax.experimental.pallas import tpu as pltpu


def _layernorm_kernel(x_ref, w_ref, b_ref, o_ref, *, eps, c, group):
    """One row-tile per grid step.

    x_ref: (TR, group*c) input rows (group rows of the original (R, c) view are
           packed along the lane axis when c is not a multiple of 128).
    w_ref / b_ref: (1, group*c) scale / shift, tiled `group` times.
    o_ref: (TR, group*c) output rows.
    """
    x = x_ref[...].astype(jnp.float32)
    w = w_ref[...].astype(jnp.float32)
    b = b_ref[...].astype(jnp.float32)
    inv_c = 1.0 / c

    if group == 1:
        # C is a multiple of 128 (or packing not applicable): plain lane reduce.
        mu = jnp.sum(x, axis=-1, keepdims=True) * inv_c
        xc = x - mu
        var = jnp.sum(xc * xc, axis=-1, keepdims=True) * inv_c   # unbiased=False
        inv = lax.rsqrt(var + eps)                               # EUP
        o_ref[...] = (xc * inv * w + b).astype(o_ref.dtype)
    else:
        # Lane-dense packed path: `group` original rows live side-by-side on the
        # lane axis.  Per-segment reductions / broadcasts go through tiny constant
        # segment matrices on the MXU (idle otherwise in this kernel).
        gc = group * c
        # S[j, g]  = 1 if lane j belongs to segment g  (shape (gc, group))
        seg_of_lane = lax.broadcasted_iota(jnp.int32, (gc, group), 0) // c
        seg_col = lax.broadcasted_iota(jnp.int32, (gc, group), 1)
        S = (seg_of_lane == seg_col).astype(jnp.float32)
        # ST[g, j] = 1 if lane j belongs to segment g  (shape (group, gc))
        lane_seg = lax.broadcasted_iota(jnp.int32, (group, gc), 1) // c
        row_seg = lax.broadcasted_iota(jnp.int32, (group, gc), 0)
        ST = (lane_seg == row_seg).astype(jnp.float32)

        seg_sum = jnp.dot(x, S, preferred_element_type=jnp.float32)        # (TR, group)
        mu = seg_sum * inv_c
        mu_full = jnp.dot(mu, ST, preferred_element_type=jnp.float32)      # (TR, gc)
        xc = x - mu_full
        seg_var = jnp.dot(xc * xc, S, preferred_element_type=jnp.float32) * inv_c
        inv = lax.rsqrt(seg_var + eps)                                     # EUP
        inv_full = jnp.dot(inv, ST, preferred_element_type=jnp.float32)    # (TR, gc)
        o_ref[...] = (xc * inv_full * w + b).astype(o_ref.dtype)


def withbias_layernorm(x, weight, bias, *, eps=1e-5,
                       vmem_budget_bytes=12 * 1024 * 1024):
    """LayerNorm over the last dim of `x` (any leading shape), I/O in x.dtype."""
    orig_shape = x.shape
    C = orig_shape[-1]
    R = int(math.prod(orig_shape[:-1])) if len(orig_shape) > 1 else 1

    itemsize = jnp.dtype(x.dtype).itemsize
    sublane_align = max(8, 32 // itemsize)      # f32 -> 8, bf16 -> 16, int8/fp8 -> 32

    # Lane-dense packing for C not a multiple of 128: pack G rows per lane-row.
    group = 1
    if C % 128 != 0:
        g = 128 // math.gcd(C, 128)
        if g > 1 and R % g == 0 and g * C <= 4096:
            group = g
    Cp = group * C
    Rp = R // group

    x2 = x.reshape(Rp, Cp)
    w2 = jnp.tile(weight.reshape(-1), group).reshape(1, Cp)
    b2 = jnp.tile(bias.reshape(-1), group).reshape(1, Cp)

    # Row tile from the VMEM byte budget: 2 input + 2 output double-buffered tiles.
    tr_budget = max(1, vmem_budget_bytes // (4 * Cp * itemsize))
    if Rp <= tr_budget:
        tr = Rp                                              # full extent: always legal
    else:
        tr = max(sublane_align, (tr_budget // sublane_align) * sublane_align)

    grid = (pl.cdiv(Rp, tr),)

    out = pl.pallas_call(
        functools.partial(_layernorm_kernel, eps=eps, c=C, group=group),
        out_shape=jax.ShapeDtypeStruct((Rp, Cp), x.dtype),
        grid_spec=pltpu.PrefetchScalarGridSpec(
            num_scalar_prefetch=0,
            grid=grid,
            in_specs=[
                pl.BlockSpec((tr, Cp), lambda i: (i, 0)),    # row tile of x
                pl.BlockSpec((1, Cp), lambda i: (0, 0)),     # weight (resident)
                pl.BlockSpec((1, Cp), lambda i: (0, 0)),     # bias   (resident)
            ],
            out_specs=pl.BlockSpec((tr, Cp), lambda i: (i, 0)),
        ),
        compiler_params=pltpu.CompilerParams(
            dimension_semantics=("parallel",),               # rows independent -> TC-shardable
            vmem_limit_bytes=32 * 1024 * 1024,               # safe on v5e/v6e/v7x
        ),
    )(x2, w2, b2)

    return out.reshape(orig_shape)


def withbias_layernorm_ref(x, weight, bias, eps=1e-5):
    """Pure-JAX reference mirroring the PyTorch forward."""
    mu = x.mean(-1, keepdims=True)
    var = ((x - mu) ** 2).mean(-1, keepdims=True)   # unbiased=False
    return (x - mu) / jnp.sqrt(var + eps) * weight + bias


if __name__ == "__main__":
    key = jax.random.PRNGKey(0)
    k1, k2, k3, k4, k5 = jax.random.split(key, 5)

    # Case 1: tokens (B, H*W, C) with C=128 (lane-dense without packing).
    B, HW, C = 2, 16 * 16, 128
    x = jax.random.normal(k1, (B, HW, C), jnp.float32)
    weight = 1.0 + 0.1 * jax.random.normal(k2, (C,), jnp.float32)
    bias = 0.1 * jax.random.normal(k3, (C,), jnp.float32)
    out = jax.block_until_ready(withbias_layernorm(x, weight, bias))
    ref = withbias_layernorm_ref(x, weight, bias)
    assert out.shape == x.shape
    assert jnp.allclose(out, ref, atol=1e-4, rtol=1e-4), "mismatch (f32, C=128)"

    # Case 2: Restormer default dim=48 -> lane-dense packed path (G=8, 384 lanes).
    C2 = 48
    x2 = jax.random.normal(k4, (B, HW, C2), jnp.float32)
    w2 = 1.0 + 0.1 * jax.random.normal(k2, (C2,), jnp.float32)
    b2 = 0.1 * jax.random.normal(k3, (C2,), jnp.float32)
    out2 = jax.block_until_ready(withbias_layernorm(x2, w2, b2))
    ref2 = withbias_layernorm_ref(x2, w2, b2)
    assert jnp.allclose(out2, ref2, atol=1e-4, rtol=1e-4), "mismatch (f32, C=48)"

    # Case 3: bf16 I/O (native-dtype HBM traffic, f32 statistics), dim=96 (G=4).
    C3 = 96
    x3 = jax.random.normal(k5, (2, 64, C3), jnp.float32).astype(jnp.bfloat16)
    w3 = jnp.ones((C3,), jnp.bfloat16)
    b3 = jnp.zeros((C3,), jnp.bfloat16)
    out3 = jax.block_until_ready(withbias_layernorm(x3, w3, b3))
    ref3 = withbias_layernorm_ref(x3.astype(jnp.float32),
                                  w3.astype(jnp.float32),
                                  b3.astype(jnp.float32))
    assert out3.dtype == jnp.bfloat16
    assert jnp.allclose(out3.astype(jnp.float32), ref3, atol=3e-2, rtol=3e-2), \
        "mismatch (bf16, C=96)"

    print("KERNEL_OK")
</pallas_src>

<mosaic_0001>
module attributes {stable_mosaic.version = 11 : i64} {
  func.func @_layernorm_kernel(%arg0: i32, %arg1: memref<512x128xf32, #tpu.memory_space<vmem>>, %arg2: memref<1x128xf32, #tpu.memory_space<vmem>>, %arg3: memref<1x128xf32, #tpu.memory_space<vmem>>, %arg4: memref<512x128xf32, #tpu.memory_space<vmem>>) attributes {dimension_semantics = [#tpu.dimension_semantics<parallel>], iteration_bounds = array<i64: 1>, scalar_prefetch = 0 : i64, scratch_operands = 0 : i64, tpu.core_type = #tpu.core_type<tc>, window_params = [{transform_indices = @transform_0, window_bounds = array<i64: 512, 128>}, {pipeline_mode = #tpu.pipeline_mode<synchronous>, transform_indices = @transform_1, window_bounds = array<i64: 1, 128>}, {pipeline_mode = #tpu.pipeline_mode<synchronous>, transform_indices = @transform_2, window_bounds = array<i64: 1, 128>}, {transform_indices = @transform_3, window_bounds = array<i64: 512, 128>}]} {
    %c0 = arith.constant 0 : index
    %c0_0 = arith.constant 0 : index
    %0 = vector.load %arg1[%c0, %c0_0] : memref<512x128xf32, #tpu.memory_space<vmem>>, vector<512x128xf32>
    %c0_1 = arith.constant 0 : index
    %c0_2 = arith.constant 0 : index
    %1 = vector.load %arg2[%c0_1, %c0_2] : memref<1x128xf32, #tpu.memory_space<vmem>>, vector<1x128xf32>
    %c0_3 = arith.constant 0 : index
    %c0_4 = arith.constant 0 : index
    %2 = vector.load %arg3[%c0_3, %c0_4] : memref<1x128xf32, #tpu.memory_space<vmem>>, vector<1x128xf32>
    %cst = arith.constant dense<0.000000e+00> : vector<512xf32>
    %3 = vector.multi_reduction <add>, %0, %cst [1] : vector<512x128xf32> to vector<512xf32>
    %4 = vector.shape_cast %3 : vector<512xf32> to vector<512x1xf32>
    %cst_5 = arith.constant 7.812500e-03 : f32
    %5 = vector.broadcast %cst_5 : f32 to vector<512x1xf32>
    %6 = arith.mulf %4, %5 : vector<512x1xf32>
    %7 = vector.broadcast %6 : vector<512x1xf32> to vector<512x128xf32>
    %8 = arith.subf %0, %7 : vector<512x128xf32>
    %9 = arith.mulf %8, %8 : vector<512x128xf32>
    %cst_6 = arith.constant dense<0.000000e+00> : vector<512xf32>
    %10 = vector.multi_reduction <add>, %9, %cst_6 [1] : vector<512x128xf32> to vector<512xf32>
    %11 = vector.shape_cast %10 : vector<512xf32> to vector<512x1xf32>
    %cst_7 = arith.constant 7.812500e-03 : f32
    %12 = vector.broadcast %cst_7 : f32 to vector<512x1xf32>
    %13 = arith.mulf %11, %12 : vector<512x1xf32>
    %cst_8 = arith.constant 9.99999974E-6 : f32
    %14 = vector.broadcast %cst_8 : f32 to vector<512x1xf32>
    %15 = arith.addf %13, %14 : vector<512x1xf32>
    %16 = math.rsqrt %15 : vector<512x1xf32>
    %17 = vector.broadcast %16 : vector<512x1xf32> to vector<512x128xf32>
    %18 = arith.mulf %8, %17 : vector<512x128xf32>
    %19 = vector.broadcast %1 : vector<1x128xf32> to vector<512x128xf32>
    %20 = arith.mulf %18, %19 : vector<512x128xf32>
    %21 = vector.broadcast %2 : vector<1x128xf32> to vector<512x128xf32>
    %22 = arith.addf %20, %21 : vector<512x128xf32>
    %c0_9 = arith.constant 0 : index
    %c0_10 = arith.constant 0 : index
    %23 = vector.load %arg4[%c0_9, %c0_10] : memref<512x128xf32, #tpu.memory_space<vmem>>, vector<512x128xf32>
    tpu.vector_store %arg4[%c0_9, %c0_10], %22 {strides = array<i32>} : memref<512x128xf32, #tpu.memory_space<vmem>>, vector<512x128xf32>,
    return
  }
  func.func @transform_0(%arg0: i32) -> (i32, i32) {
    %c0_i32 = arith.constant 0 : i32
    %c0_i32_0 = arith.constant 0 : i32
    return %arg0, %c0_i32 : i32, i32
  }
  func.func @transform_1(%arg0: i32) -> (i32, i32) {
    %c0_i32 = arith.constant 0 : i32
    %c0_i32_0 = arith.constant 0 : i32
    %c0_i32_1 = arith.constant 0 : i32
    return %c0_i32, %c0_i32_0 : i32, i32
  }
  func.func @transform_2(%arg0: i32) -> (i32, i32) {
    %c0_i32 = arith.constant 0 : i32
    %c0_i32_0 = arith.constant 0 : i32
    %c0_i32_1 = arith.constant 0 : i32
    return %c0_i32, %c0_i32_0 : i32, i32
  }
  func.func @transform_3(%arg0: i32) -> (i32, i32) {
    %c0_i32 = arith.constant 0 : i32
    %c0_i32_0 = arith.constant 0 : i32
    return %arg0, %c0_i32 : i32, i32
  }
}

</mosaic_0001>

<bundles_post_ra>
// kernel: tpu_custom_call.1
= control target key start
LH: loop header
LB: loop body
LE: loop exit
PB: predicated region body
PF: predicated region fallthrough
CT: control target
= control target key end

     0   :  { %8 = vsyncpa [#allocation3], 0  ;;  %s1963_s0 = inlined_call_operand.hbm [shape: f32[512,128], index: 0, kind: input, shape index: {}]   ;;  %s1964_s1 = inlined_call_operand.vmem [shape: f32[1,128], index: 1, kind: input, shape index: {}]   ;;  %s1965_s2 = inlined_call_operand.vmem [shape: f32[1,128], index: 2, kind: input, shape index: {}]   ;;  %s1966_s3 = inlined_call_operand.hbm [shape: f32[512,128], index: 3, kind: output, shape index: {}]  }
   0x1   :  { %9 = vsyncpa [#allocation4], 0  ;;  %s1204_s12 = smov [#allocation2]   ;;  %s1156_s16 = scalar_lea.hbm %s1963_s0, 8192 }
   0x2   :  { %s15_s13 = sshll.u32 %s1204_s12, 4  ;;  %p1157_p0 = scmp.ne.s32.totalorder %s1963_s0, %s1156_s16  ;;  %s16_s13 = int_to_ptr.vmem [resolvable:$true] %s15_s13 }
   0x3   :  { %p1160_p1 = scmp.lt.u32.totalorder %s1156_s16, %s1963_s0 }
   0x5   :  { %p1162_p2 = pnand %p1160_p1, %p1157_p0 }
   0x7   :  { %1165 = shalt.err (!%p1162_p2)
}
   0x8   :  { %s1166_s21 = scalar_lea.vmem %s16_s13, 8192  ;;  %p1171_p4 = scmp.lt.s32.totalorder %s16_s13, %s16_s13 }
   0x9   :  { %p1167_p3 = scmp.ne.s32.totalorder %s16_s13, %s1166_s21  ;;  %p1172_p5 = scmp.lt.s32.totalorder %s1166_s21, %s1166_s21 }
   0xb   :  { %p1173_p6 = por %p1172_p5, %p1171_p4 }
   0xd   :  { %p1174_p7 = pnand %p1173_p6, %p1167_p3 }
   0xf   :  { %1177 = shalt.err (!%p1174_p7)
}
  0x10   :  { %s1205_s22 = smov 128   ;;  %s1206_s23 = smov 8  }
  0x11   :  { %21 = dma.hbm_to_vmem [thread:$0]  %s1963_s0, 8192, %s16_s13, [#allocation3], %s1205_s22, %s1205_s22, %s1206_s23  }
  0x12   :  { %1200 = dma.done.wait [#allocation3], 8192  }
  0x13   :  { %1201 = vsyncadd [#allocation3], 4294959104  ;;  %v1243_v0 = vld [vmem:[#allocation2] sm:$0xff]  ;;  %v1245_v1 = vld [vmem:[#allocation2 + $0x10] sm:$0xff] }
  0x14   :  { %95 = vadd.xlane.f32.xlu0 %v1243_v0  ;;  %99 = vadd.xlane.f32.xlu1 %v1245_v1  ;;  %v1249_v2 = vld [vmem:[#allocation2 + $0x8] sm:$0xff]  ;;  %v1251_v3 = vld [vmem:[#allocation2 + $0x18] sm:$0xff]  ;;  %v1255_v4 = vld [vmem:[#allocation2 + $0x20] sm:$0xff] }
  0x15   :  { %v1257_v5 = vld [vmem:[#allocation2 + $0x28] sm:$0xff]  ;;  %v1261_v6 = vld [vmem:[#allocation2 + $0x30] sm:$0xff]  ;;  %v1263_v7 = vld [vmem:[#allocation2 + $0x38] sm:$0xff] }
  0x16   :  { %v1267_v8 = vld [vmem:[#allocation2 + $0x40] sm:$0xff]  ;;  %v1269_v9 = vld [vmem:[#allocation2 + $0x48] sm:$0xff]  ;;  %v1273_v10 = vld [vmem:[#allocation2 + $0x50] sm:$0xff] }
  0x17   :  { %v1275_v11 = vld [vmem:[#allocation2 + $0x58] sm:$0xff]  ;;  %v1279_v12 = vld [vmem:[#allocation2 + $0x60] sm:$0xff]  ;;  %v1281_v13 = vld [vmem:[#allocation2 + $0x68] sm:$0xff] }
  0x18   :  { %97 = vadd.xlane.f32.xlu0 %v1249_v2  ;;  %101 = vadd.xlane.f32.xlu1 %v1251_v3  ;;  %v1285_v14 = vld [vmem:[#allocation2 + $0x70] sm:$0xff]  ;;  %v1287_v15 = vld [vmem:[#allocation2 + $0x78] sm:$0xff]  ;;  %v1291_v16 = vld [vmem:[#allocation2 + $0x80] sm:$0xff] }
  0x19   :  { %v1293_v17 = vld [vmem:[#allocation2 + $0x88] sm:$0xff]  ;;  %v1297_v18 = vld [vmem:[#allocation2 + $0x90] sm:$0xff]  ;;  %v1299_v19 = vld [vmem:[#allocation2 + $0x98] sm:$0xff] }
  0x1a   :  { %v1303_v20 = vld [vmem:[#allocation2 + $0xa0] sm:$0xff]  ;;  %v1305_v21 = vld [vmem:[#allocation2 + $0xa8] sm:$0xff]  ;;  %v1309_v22 = vld [vmem:[#allocation2 + $0xb0] sm:$0xff] }
  0x1b   :  { %v1311_v23 = vld [vmem:[#allocation2 + $0xb8] sm:$0xff]  ;;  %v1315_v24 = vld [vmem:[#allocation2 + $0xc0] sm:$0xff]  ;;  %v1317_v25 = vld [vmem:[#allocation2 + $0xc8] sm:$0xff] }
  0x1c   :  { %103 = vadd.xlane.f32.xlu0 %v1255_v4  ;;  %105 = vadd.xlane.f32.xlu1 %v1257_v5  ;;  %v1321_v26 = vld [vmem:[#allocation2 + $0xd0] sm:$0xff]  ;;  %v1323_v27 = vld [vmem:[#allocation2 + $0xd8] sm:$0xff]  ;;  %v1327_v28 = vld [vmem:[#allocation2 + $0xe0] sm:$0xff] }
  0x1d   :  { %v1329_v29 = vld [vmem:[#allocation2 + $0xe8] sm:$0xff]  ;;  %v1333_v30 = vld [vmem:[#allocation2 + $0xf0] sm:$0xff]  ;;  %v1335_v31 = vld [vmem:[#allocation2 + $0xf8] sm:$0xff] }
  0x1e   :  { %v1339_v32 = vld [vmem:[#allocation2 + $0x100] sm:$0xff]  ;;  %v1341_v33 = vld [vmem:[#allocation2 + $0x108] sm:$0xff]  ;;  %v1345_v34 = vld [vmem:[#allocation2 + $0x110] sm:$0xff] }
  0x1f   :  { %v1347_v35 = vld [vmem:[#allocation2 + $0x118] sm:$0xff]  ;;  %v1351_v36 = vld [vmem:[#allocation2 + $0x120] sm:$0xff]  ;;  %v1353_v37 = vld [vmem:[#allocation2 + $0x128] sm:$0xff] }
  0x20   :  { %107 = vadd.xlane.f32.xlu0 %v1261_v6  ;;  %109 = vadd.xlane.f32.xlu1 %v1263_v7  ;;  %v1357_v38 = vld [vmem:[#allocation2 + $0x130] sm:$0xff]  ;;  %v1359_v39 = vld [vmem:[#allocation2 + $0x138] sm:$0xff]  ;;  %v1363_v40 = vld [vmem:[#allocation2 + $0x140] sm:$0xff] }
  0x21   :  { %v1365_v41 = vld [vmem:[#allocation2 + $0x148] sm:$0xff]  ;;  %v1369_v42 = vld [vmem:[#allocation2 + $0x150] sm:$0xff]  ;;  %v1371_v43 = vld [vmem:[#allocation2 + $0x158] sm:$0xff] }
  0x22   :  { %v1375_v44 = vld [vmem:[#allocation2 + $0x160] sm:$0xff]  ;;  %v1377_v45 = vld [vmem:[#allocation2 + $0x168] sm:$0xff]  ;;  %v1381_v46 = vld [vmem:[#allocation2 + $0x170] sm:$0xff] }
  0x23   :  { %v1383_v47 = vld [vmem:[#allocation2 + $0x178] sm:$0xff]  ;;  %v1387_v48 = vld [vmem:[#allocation2 + $0x180] sm:$0xff]  ;;  %v1389_v49 = vld [vmem:[#allocation2 + $0x188] sm:$0xff] }
  0x24   :  { %111 = vadd.xlane.f32.xlu0 %v1267_v8  ;;  %113 = vadd.xlane.f32.xlu1 %v1269_v9  ;;  %v1393_v50 = vld [vmem:[#allocation2 + $0x190] sm:$0xff]  ;;  %v1395_v51 = vld [vmem:[#allocation2 + $0x198] sm:$0xff]  ;;  %v1399_v52 = vld [vmem:[#allocation2 + $0x1a0] sm:$0xff] }
  0x25   :  { %2000 = vst [vmem:[#allocation8_spill] sm:$0xff] %v1395_v51  ;;  %2001 = vst [vmem:[#allocation9_spill] sm:$0xff] %v1399_v52  ;;  %v1401_v53 = vld [vmem:[#allocation2 + $0x1a8] sm:$0xff]  ;;  %v1405_v54 = vld [vmem:[#allocation2 + $0x1b0] sm:$0xff] }
  0x26   :  { %2002 = vst [vmem:[#allocation10_spill] sm:$0xff] %v1401_v53  ;;  %2003 = vst [vmem:[#allocation11_spill] sm:$0xff] %v1405_v54  ;;  %v1407_v55 = vld [vmem:[#allocation2 + $0x1b8] sm:$0xff]  ;;  %v1411_v56 = vld [vmem:[#allocation2 + $0x1c0] sm:$0xff] }
  0x27   :  { %2004 = vst [vmem:[#allocation12_spill] sm:$0xff] %v1407_v55  ;;  %2005 = vst [vmem:[#allocation13_spill] sm:$0xff] %v1411_v56  ;;  %v1413_v57 = vld [vmem:[#allocation2 + $0x1c8] sm:$0xff]  ;;  %v1417_v58 = vld [vmem:[#allocation2 + $0x1d0] sm:$0xff] }
  0x28   :  { %115 = vadd.xlane.f32.xlu0 %v1273_v10  ;;  %117 = vadd.xlane.f32.xlu1 %v1275_v11  ;;  %2006 = vst [vmem:[#allocation14_spill] sm:$0xff] %v1413_v57  ;;  %2007 = vst [vmem:[#allocation15_spill] sm:$0xff] %v1417_v58  ;;  %v1419_v59 = vld [vmem:[#allocation2 + $0x1d8] sm:$0xff]  ;;  %v1423_v60 = vld [vmem:[#allocation2 + $0x1e0] sm:$0xff] }
  0x29   :  { %2008 = vst [vmem:[#allocation16_spill] sm:$0xff] %v1419_v59  ;;  %2009 = vst [vmem:[#allocation17_spill] sm:$0xff] %v1423_v60  ;;  %v1425_v61 = vld [vmem:[#allocation2 + $0x1e8] sm:$0xff]  ;;  %v1429_v62 = vld [vmem:[#allocation2 + $0x1f0] sm:$0xff] }
  0x2a   :  { %2010 = vst [vmem:[#allocation18_spill] sm:$0xff] %v1425_v61  ;;  %v1431_v63 = vld [vmem:[#allocation2 + $0x1f8] sm:$0xff] }
  0x2b   :  { %2011 = vst [vmem:[#allocation19_spill] sm:$0xff] %v1431_v63 }
  0x2c   :  { %119 = vadd.xlane.f32.xlu0 %v1279_v12  ;;  %121 = vadd.xlane.f32.xlu1 %v1281_v13 }
  0x30   :  { %123 = vadd.xlane.f32.xlu0 %v1285_v14  ;;  %125 = vadd.xlane.f32.xlu1 %v1287_v15 }
  0x34   :  { %127 = vadd.xlane.f32.xlu0 %v1291_v16  ;;  %129 = vadd.xlane.f32.xlu1 %v1293_v17 }
  0x38   :  { %131 = vadd.xlane.f32.xlu0 %v1297_v18  ;;  %133 = vadd.xlane.f32.xlu1 %v1299_v19 }
  0x3c   :  { %135 = vadd.xlane.f32.xlu0 %v1303_v20  ;;  %137 = vadd.xlane.f32.xlu1 %v1305_v21 }
  0x40   :  { %139 = vadd.xlane.f32.xlu0 %v1309_v22  ;;  %141 = vadd.xlane.f32.xlu1 %v1311_v23 }
  0x44   :  { %143 = vadd.xlane.f32.xlu0 %v1315_v24  ;;  %145 = vadd.xlane.f32.xlu1 %v1317_v25 }
  0x48   :  { %147 = vadd.xlane.f32.xlu0 %v1321_v26  ;;  %149 = vadd.xlane.f32.xlu1 %v1323_v27 }
  0x4c   :  { %151 = vadd.xlane.f32.xlu0 %v1327_v28  ;;  %153 = vadd.xlane.f32.xlu1 %v1329_v29 }
  0x50   :  { %155 = vadd.xlane.f32.xlu0 %v1333_v30  ;;  %157 = vadd.xlane.f32.xlu1 %v1335_v31 }
  0x54   :  { %159 = vadd.xlane.f32.xlu0 %v1339_v32  ;;  %161 = vadd.xlane.f32.xlu1 %v1341_v33 }
  0x58   :  { %163 = vadd.xlane.f32.xlu0 %v1345_v34  ;;  %165 = vadd.xlane.f32.xlu1 %v1347_v35 }
  0x5c   :  { %167 = vadd.xlane.f32.xlu0 %v1351_v36  ;;  %169 = vadd.xlane.f32.xlu1 %v1353_v37 }
  0x60   :  { %171 = vadd.xlane.f32.xlu0 %v1357_v38  ;;  %173 = vadd.xlane.f32.xlu1 %v1359_v39 }
  0x64   :  { %175 = vadd.xlane.f32.xlu0 %v1363_v40  ;;  %177 = vadd.xlane.f32.xlu1 %v1365_v41 }
  0x68   :  { %179 = vadd.xlane.f32.xlu0 %v1369_v42  ;;  %181 = vadd.xlane.f32.xlu1 %v1371_v43 }
  0x6c   :  { %183 = vadd.xlane.f32.xlu0 %v1375_v44  ;;  %185 = vadd.xlane.f32.xlu1 %v1377_v45 }
  0x70   :  { %187 = vadd.xlane.f32.xlu0 %v1381_v46  ;;  %189 = vadd.xlane.f32.xlu1 %v1383_v47 }
  0x74   :  { %191 = vadd.xlane.f32.xlu0 %v1387_v48  ;;  %193 = vadd.xlane.f32.xlu1 %v1389_v49 }
  0x78   :  { %195 = vadd.xlane.f32.xlu0 %v1393_v50  ;;  %197 = vadd.xlane.f32.xlu1 %v1395_v51 }
  0x7c   :  { %199 = vadd.xlane.f32.xlu0 %v1399_v52  ;;  %201 = vadd.xlane.f32.xlu1 %v1401_v53 }
  0x80   :  { %203 = vadd.xlane.f32.xlu0 %v1405_v54  ;;  %205 = vadd.xlane.f32.xlu1 %v1407_v55 }
  0x84   :  { %207 = vadd.xlane.f32.xlu0 %v1411_v56  ;;  %209 = vadd.xlane.f32.xlu1 %v1413_v57 }
  0x88   :  { %211 = vadd.xlane.f32.xlu0 %v1417_v58  ;;  %213 = vadd.xlane.f32.xlu1 %v1419_v59 }
  0x8c   :  { %215 = vadd.xlane.f32.xlu0 %v1423_v60  ;;  %217 = vadd.xlane.f32.xlu1 %v1425_v61 }
  0x90   :  { %219 = vadd.xlane.f32.xlu0 %v1429_v62  ;;  %221 = vadd.xlane.f32.xlu1 %v1431_v63 }
  0xa1   :  { %v96_v57 = vpop.xlane.xlu0 %95  ;;  %v100_v58 = vpop.xlane.xlu1 %99 }
  0xa2   :  { %v223_v56 = vmul.f32 0.0078125, %v96_v57  ;;  %v225_v59 = vmul.f32 0.0078125, %v100_v58 }
  0xa4   :  { %v1436_v55 = vsub.f32 %v1243_v0, %v223_v56  ;;  %v1439_v54 = vsub.f32 %v1245_v1, %v225_v59 }
  0xa5   :  { %v98_v60 = vpop.xlane.xlu0 %97  ;;  %v102_v61 = vpop.xlane.xlu1 %101 }
  0xa6   :  { %2012 = vst [vmem:[#allocation20_spill] sm:$0xff] %v1439_v54  ;;  %v224_v53 = vmul.f32 0.0078125, %v98_v60  ;;  %v351_v52 = vmul.f32 %v1436_v55, %v1436_v55  ;;  %v226_v51 = vmul.f32 0.0078125, %v102_v61  ;;  %v353_v63 = vmul.f32 %v1439_v54, %v1439_v54 }
  0xa8   :  { %415 = vadd.xlane.f32.xlu0 %v351_v52  ;;  %v1446_v57 = vsub.f32 %v1249_v2, %v224_v53  ;;  %v1449_v0 = vsub.f32 %v1251_v3, %v226_v51 }
  0xa9   :  { %v104_v56 = vpop.xlane.xlu0 %103  ;;  %v106_v1 = vpop.xlane.xlu1 %105 }
  0xaa   :  { %v227_v58 = vmul.f32 0.0078125, %v104_v56  ;;  %v352_v59 = vmul.f32 %v1446_v57, %v1446_v57  ;;  %v228_v60 = vmul.f32 0.0078125, %v106_v1  ;;  %v354_v52 = vmul.f32 %v1449_v0, %v1449_v0 }
  0xac   :  { %419 = vadd.xlane.f32.xlu0 %v353_v63  ;;  %417 = vadd.xlane.f32.xlu1 %v352_v59  ;;  %v1456_v61 = vsub.f32 %v1255_v4, %v227_v58  ;;  %v1459_v2 = vsub.f32 %v1257_v5, %v228_v60 }
  0xad   :  { %v108_v3 = vpop.xlane.xlu0 %107  ;;  %v110_v51 = vpop.xlane.xlu1 %109 }
  0xae   :  { %v229_v53 = vmul.f32 0.0078125, %v108_v3  ;;  %v355_v56 = vmul.f32 %v1456_v61, %v1456_v61  ;;  %v230_v54 = vmul.f32 0.0078125, %v110_v51  ;;  %v356_v63 = vmul.f32 %v1459_v2, %v1459_v2 }
  0xb0   :  { %421 = vadd.xlane.f32.xlu1 %v354_v52  ;;  %423 = vadd.xlane.f32.xlu0 %v355_v56  ;;  %v1466_v1 = vsub.f32 %v1261_v6, %v229_v53  ;;  %v1469_v4 = vsub.f32 %v1263_v7, %v230_v54 }
  0xb1   :  { %v112_v5 = vpop.xlane.xlu0 %111  ;;  %v114_v58 = vpop.xlane.xlu1 %113 }
  0xb2   :  { %v231_v59 = vmul.f32 0.0078125, %v112_v5  ;;  %v357_v60 = vmul.f32 %v1466_v1, %v1466_v1  ;;  %v232_v3 = vmul.f32 0.0078125, %v114_v58  ;;  %v358_v52 = vmul.f32 %v1469_v4, %v1469_v4 }
  0xb4   :  { %425 = vadd.xlane.f32.xlu1 %v356_v63  ;;  %427 = vadd.xlane.f32.xlu0 %v357_v60  ;;  %v1476_v51 = vsub.f32 %v1267_v8, %v231_v59  ;;  %v1479_v6 = vsub.f32 %v1269_v9, %v232_v3 }
  0xb5   :  { %v116_v7 = vpop.xlane.xlu0 %115  ;;  %v118_v54 = vpop.xlane.xlu1 %117 }
  0xb6   :  { %v233_v53 = vmul.f32 0.0078125, %v116_v7  ;;  %v359_v56 = vmul.f32 %v1476_v51, %v1476_v51  ;;  %v234_v5 = vmul.f32 0.0078125, %v118_v54  ;;  %v360_v63 = vmul.f32 %v1479_v6, %v1479_v6 }
  0xb8   :  { %429 = vadd.xlane.f32.xlu1 %v358_v52  ;;  %431 = vadd.xlane.f32.xlu0 %v359_v56  ;;  %v1486_v58 = vsub.f32 %v1273_v10, %v233_v53  ;;  %v1489_v8 = vsub.f32 %v1275_v11, %v234_v5 }
  0xb9   :  { %v120_v9 = vpop.xlane.xlu0 %119  ;;  %v122_v59 = vpop.xlane.xlu1 %121 }
  0xba   :  { %v235_v60 = vmul.f32 0.0078125, %v120_v9  ;;  %v361_v3 = vmul.f32 %v1486_v58, %v1486_v58  ;;  %v236_v7 = vmul.f32 0.0078125, %v122_v59  ;;  %v362_v52 = vmul.f32 %v1489_v8, %v1489_v8 }
  0xbc   :  { %433 = vadd.xlane.f32.xlu1 %v360_v63  ;;  %435 = vadd.xlane.f32.xlu0 %v361_v3  ;;  %v1496_v54 = vsub.f32 %v1279_v12, %v235_v60  ;;  %v1499_v10 = vsub.f32 %v1281_v13, %v236_v7 }
  0xbd   :  { %v124_v11 = vpop.xlane.xlu0 %123  ;;  %v126_v53 = vpop.xlane.xlu1 %125 }
  0xbe   :  { %v237_v56 = vmul.f32 0.0078125, %v124_v11  ;;  %v363_v5 = vmul.f32 %v1496_v54, %v1496_v54  ;;  %v238_v9 = vmul.f32 0.0078125, %v126_v53  ;;  %v364_v63 = vmul.f32 %v1499_v10, %v1499_v10 }
  0xc0   :  { %437 = vadd.xlane.f32.xlu1 %v362_v52  ;;  %439 = vadd.xlane.f32.xlu0 %v363_v5  ;;  %v1506_v59 = vsub.f32 %v1285_v14, %v237_v56  ;;  %v1509_v12 = vsub.f32 %v1287_v15, %v238_v9 }
  0xc1   :  { %v128_v13 = vpop.xlane.xlu0 %127  ;;  %v130_v60 = vpop.xlane.xlu1 %129 }
  0xc2   :  { %v239_v3 = vmul.f32 0.0078125, %v128_v13  ;;  %v365_v7 = vmul.f32 %v1506_v59, %v1506_v59  ;;  %v240_v11 = vmul.f32 0.0078125, %v130_v60  ;;  %v366_v52 = vmul.f32 %v1509_v12, %v1509_v12 }
  0xc4   :  { %441 = vadd.xlane.f32.xlu1 %v364_v63  ;;  %443 = vadd.xlane.f32.xlu0 %v365_v7  ;;  %v1516_v53 = vsub.f32 %v1291_v16, %v239_v3  ;;  %v1519_v14 = vsub.f32 %v1293_v17, %v240_v11 }
  0xc5   :  { %v132_v15 = vpop.xlane.xlu0 %131  ;;  %v134_v56 = vpop.xlane.xlu1 %133 }
  0xc6   :  { %v241_v5 = vmul.f32 0.0078125, %v132_v15  ;;  %v367_v9 = vmul.f32 %v1516_v53, %v1516_v53  ;;  %v242_v13 = vmul.f32 0.0078125, %v134_v56  ;;  %v368_v63 = vmul.f32 %v1519_v14, %v1519_v14 }
  0xc8   :  { %445 = vadd.xlane.f32.xlu1 %v366_v52  ;;  %447 = vadd.xlane.f32.xlu0 %v367_v9  ;;  %v1526_v60 = vsub.f32 %v1297_v18, %v241_v5  ;;  %v1529_v16 = vsub.f32 %v1299_v19, %v242_v13 }
  0xc9   :  { %v136_v17 = vpop.xlane.xlu0 %135  ;;  %v138_v3 = vpop.xlane.xlu1 %137 }
  0xca   :  { %v243_v7 = vmul.f32 0.0078125, %v136_v17  ;;  %v369_v11 = vmul.f32 %v1526_v60, %v1526_v60  ;;  %v244_v15 = vmul.f32 0.0078125, %v138_v3  ;;  %v370_v52 = vmul.f32 %v1529_v16, %v1529_v16 }
  0xcc   :  { %449 = vadd.xlane.f32.xlu1 %v368_v63  ;;  %451 = vadd.xlane.f32.xlu0 %v369_v11  ;;  %v1536_v56 = vsub.f32 %v1303_v20, %v243_v7  ;;  %v1539_v18 = vsub.f32 %v1305_v21, %v244_v15 }
  0xcd   :  { %v140_v19 = vpop.xlane.xlu0 %139  ;;  %v142_v5 = vpop.xlane.xlu1 %141 }
  0xce   :  { %v245_v9 = vmul.f32 0.0078125, %v140_v19  ;;  %v371_v13 = vmul.f32 %v1536_v56, %v1536_v56  ;;  %v246_v17 = vmul.f32 0.0078125, %v142_v5  ;;  %v372_v63 = vmul.f32 %v1539_v18, %v1539_v18 }
  0xd0   :  { %453 = vadd.xlane.f32.xlu1 %v370_v52  ;;  %455 = vadd.xlane.f32.xlu0 %v371_v13  ;;  %v1546_v3 = vsub.f32 %v1309_v22, %v245_v9  ;;  %v1549_v20 = vsub.f32 %v1311_v23, %v246_v17 }
  0xd1   :  { %v144_v21 = vpop.xlane.xlu0 %143  ;;  %v146_v7 = vpop.xlane.xlu1 %145 }
  0xd2   :  { %v247_v11 = vmul.f32 0.0078125, %v144_v21  ;;  %v373_v15 = vmul.f32 %v1546_v3, %v1546_v3  ;;  %v248_v19 = vmul.f32 0.0078125, %v146_v7  ;;  %v374_v52 = vmul.f32 %v1549_v20, %v1549_v20 }
  0xd4   :  { %457 = vadd.xlane.f32.xlu1 %v372_v63  ;;  %459 = vadd.xlane.f32.xlu0 %v373_v15  ;;  %v1556_v5 = vsub.f32 %v1315_v24, %v247_v11  ;;  %v1559_v22 = vsub.f32 %v1317_v25, %v248_v19 }
  0xd5   :  { %v148_v23 = vpop.xlane.xlu0 %147  ;;  %v150_v9 = vpop.xlane.xlu1 %149 }
  0xd6   :  { %v249_v13 = vmul.f32 0.0078125, %v148_v23  ;;  %v375_v17 = vmul.f32 %v1556_v5, %v1556_v5  ;;  %v250_v21 = vmul.f32 0.0078125, %v150_v9  ;;  %v376_v63 = vmul.f32 %v1559_v22, %v1559_v22 }
  0xd8   :  { %461 = vadd.xlane.f32.xlu1 %v374_v52  ;;  %463 = vadd.xlane.f32.xlu0 %v375_v17  ;;  %v1566_v7 = vsub.f32 %v1321_v26, %v249_v13  ;;  %v1569_v24 = vsub.f32 %v1323_v27, %v250_v21 }
  0xd9   :  { %v152_v25 = vpop.xlane.xlu0 %151  ;;  %v154_v11 = vpop.xlane.xlu1 %153 }
  0xda   :  { %v251_v15 = vmul.f32 0.0078125, %v152_v25  ;;  %v377_v19 = vmul.f32 %v1566_v7, %v1566_v7  ;;  %v252_v23 = vmul.f32 0.0078125, %v154_v11  ;;  %v378_v52 = vmul.f32 %v1569_v24, %v1569_v24 }
  0xdc   :  { %465 = vadd.xlane.f32.xlu1 %v376_v63  ;;  %467 = vadd.xlane.f32.xlu0 %v377_v19  ;;  %v1576_v9 = vsub.f32 %v1327_v28, %v251_v15  ;;  %v1579_v26 = vsub.f32 %v1329_v29, %v252_v23 }
  0xdd   :  { %v156_v27 = vpop.xlane.xlu0 %155  ;;  %v158_v13 = vpop.xlane.xlu1 %157 }
  0xde   :  { %v253_v17 = vmul.f32 0.0078125, %v156_v27  ;;  %v379_v21 = vmul.f32 %v1576_v9, %v1576_v9  ;;  %v254_v25 = vmul.f32 0.0078125, %v158_v13  ;;  %v380_v28 = vmul.f32 %v1579_v26, %v1579_v26 }
  0xe0   :  { %v1584_v11 = vsub.f32 %v1333_v30, %v253_v17  ;;  %469 = vadd.xlane.f32.xlu1 %v378_v52  ;;  %471 = vadd.xlane.f32.xlu0 %v379_v21  ;;  %v1587_v63 = vsub.f32 %v1335_v31, %v254_v25 }
  0xe1   :  { %v160_v29 = vpop.xlane.xlu0 %159  ;;  %v162_v15 = vpop.xlane.xlu1 %161 }
  0xe2   :  { %v255_v19 = vmul.f32 0.0078125, %v160_v29  ;;  %v381_v23 = vmul.f32 %v1584_v11, %v1584_v11  ;;  %v256_v27 = vmul.f32 0.0078125, %v162_v15  ;;  %v382_v31 = vmul.f32 %v1587_v63, %v1587_v63 }
  0xe4   :  { %v1594_v13 = vsub.f32 %v1339_v32, %v255_v19  ;;  %473 = vadd.xlane.f32.xlu1 %v380_v28  ;;  %475 = vadd.xlane.f32.xlu0 %v381_v23  ;;  %v1597_v30 = vsub.f32 %v1341_v33, %v256_v27 }
  0xe5   :  { %v164_v52 = vpop.xlane.xlu0 %163  ;;  %v166_v17 = vpop.xlane.xlu1 %165 }
  0xe6   :  { %v257_v21 = vmul.f32 0.0078125, %v164_v52  ;;  %v383_v25 = vmul.f32 %v1594_v13, %v1594_v13  ;;  %v258_v29 = vmul.f32 0.0078125, %v166_v17  ;;  %v384_v33 = vmul.f32 %v1597_v30, %v1597_v30 }
  0xe8   :  { %v1604_v15 = vsub.f32 %v1345_v34, %v257_v21  ;;  %477 = vadd.xlane.f32.xlu1 %v382_v31  ;;  %479 = vadd.xlane.f32.xlu0 %v383_v25  ;;  %v1607_v32 = vsub.f32 %v1347_v35, %v258_v29 }
  0xe9   :  { %v168_v28 = vpop.xlane.xlu0 %167  ;;  %v170_v19 = vpop.xlane.xlu1 %169 }
  0xea   :  { %v259_v23 = vmul.f32 0.0078125, %v168_v28  ;;  %v385_v27 = vmul.f32 %v1604_v15, %v1604_v15  ;;  %v260_v52 = vmul.f32 0.0078125, %v170_v19  ;;  %v386_v35 = vmul.f32 %v1607_v32, %v1607_v32 }
  0xec   :  { %v1614_v17 = vsub.f32 %v1351_v36, %v259_v23  ;;  %481 = vadd.xlane.f32.xlu1 %v384_v33  ;;  %483 = vadd.xlane.f32.xlu0 %v385_v27  ;;  %v1617_v34 = vsub.f32 %v1353_v37, %v260_v52 }
  0xed   :  { %v172_v31 = vpop.xlane.xlu0 %171  ;;  %v174_v21 = vpop.xlane.xlu1 %173 }
  0xee   :  { %v261_v25 = vmul.f32 0.0078125, %v172_v31  ;;  %v387_v29 = vmul.f32 %v1614_v17, %v1614_v17  ;;  %v262_v28 = vmul.f32 0.0078125, %v174_v21  ;;  %v388_v37 = vmul.f32 %v1617_v34, %v1617_v34 }
  0xf0   :  { %v1624_v19 = vsub.f32 %v1357_v38, %v261_v25  ;;  %485 = vadd.xlane.f32.xlu1 %v386_v35  ;;  %487 = vadd.xlane.f32.xlu0 %v387_v29  ;;  %v1627_v36 = vsub.f32 %v1359_v39, %v262_v28 }
  0xf1   :  { %v176_v33 = vpop.xlane.xlu0 %175  ;;  %v178_v23 = vpop.xlane.xlu1 %177 }
  0xf2   :  { %v263_v27 = vmul.f32 0.0078125, %v176_v33  ;;  %v389_v52 = vmul.f32 %v1624_v19, %v1624_v19  ;;  %v264_v31 = vmul.f32 0.0078125, %v178_v23  ;;  %v390_v39 = vmul.f32 %v1627_v36, %v1627_v36 }
  0xf4   :  { %v1634_v21 = vsub.f32 %v1363_v40, %v263_v27  ;;  %489 = vadd.xlane.f32.xlu1 %v388_v37  ;;  %491 = vadd.xlane.f32.xlu0 %v389_v52  ;;  %v1637_v38 = vsub.f32 %v1365_v41, %v264_v31 }
  0xf5   :  { %v180_v35 = vpop.xlane.xlu0 %179  ;;  %v182_v25 = vpop.xlane.xlu1 %181 }
  0xf6   :  { %v265_v29 = vmul.f32 0.0078125, %v180_v35  ;;  %v391_v28 = vmul.f32 %v1634_v21, %v1634_v21  ;;  %v266_v33 = vmul.f32 0.0078125, %v182_v25  ;;  %v392_v41 = vmul.f32 %v1637_v38, %v1637_v38 }
  0xf8   :  { %v1644_v23 = vsub.f32 %v1369_v42, %v265_v29  ;;  %493 = vadd.xlane.f32.xlu1 %v390_v39  ;;  %495 = vadd.xlane.f32.xlu0 %v391_v28  ;;  %v1647_v40 = vsub.f32 %v1371_v43, %v266_v33 }
  0xf9   :  { %v184_v37 = vpop.xlane.xlu0 %183  ;;  %v186_v27 = vpop.xlane.xlu1 %185 }
  0xfa   :  { %v267_v52 = vmul.f32 0.0078125, %v184_v37  ;;  %v393_v31 = vmul.f32 %v1644_v23, %v1644_v23  ;;  %v268_v35 = vmul.f32 0.0078125, %v186_v27  ;;  %v394_v43 = vmul.f32 %v1647_v40, %v1647_v40 }
  0xfc   :  { %v1654_v25 = vsub.f32 %v1375_v44, %v267_v52  ;;  %497 = vadd.xlane.f32.xlu1 %v392_v41  ;;  %499 = vadd.xlane.f32.xlu0 %v393_v31  ;;  %v1657_v42 = vsub.f32 %v1377_v45, %v268_v35 }
  0xfd   :  { %v188_v39 = vpop.xlane.xlu0 %187  ;;  %v190_v29 = vpop.xlane.xlu1 %189 }
  0xfe   :  { %2013 = vst [vmem:[#allocation21_spill] sm:$0xff] %v1654_v25  ;;  %2014 = vst [vmem:[#allocation22_spill] sm:$0xff] %v1657_v42  ;;  %v269_v28 = vmul.f32 0.0078125, %v188_v39  ;;  %v395_v33 = vmul.f32 %v1654_v25, %v1654_v25  ;;  %v270_v37 = vmul.f32 0.0078125, %v190_v29  ;;  %v396_v45 = vmul.f32 %v1657_v42, %v1657_v42 }
 0x100   :  { %v1664_v27 = vsub.f32 %v1381_v46, %v269_v28  ;;  %501 = vadd.xlane.f32.xlu1 %v394_v43  ;;  %503 = vadd.xlane.f32.xlu0 %v395_v33  ;;  %v1667_v44 = vsub.f32 %v1383_v47, %v270_v37 }
 0x101   :  { %v192_v41 = vpop.xlane.xlu0 %191  ;;  %v194_v52 = vpop.xlane.xlu1 %193 }
 0x102   :  { %2015 = vst [vmem:[#allocation23_spill] sm:$0xff] %v1664_v27  ;;  %2016 = vst [vmem:[#allocation24_spill] sm:$0xff] %v1667_v44  ;;  %v271_v31 = vmul.f32 0.0078125, %v192_v41  ;;  %v397_v35 = vmul.f32 %v1664_v27, %v1664_v27  ;;  %v272_v39 = vmul.f32 0.0078125, %v194_v52  ;;  %v398_v47 = vmul.f32 %v1667_v44, %v1667_v44 }
 0x104   :  { %v1674_v29 = vsub.f32 %v1387_v48, %v271_v31  ;;  %505 = vadd.xlane.f32.xlu1 %v396_v45  ;;  %507 = vadd.xlane.f32.xlu0 %v397_v35  ;;  %v1677_v46 = vsub.f32 %v1389_v49, %v272_v39  ;;  %v2020_v48 = vld [vmem:[#allocation8_spill] sm:$0xff] }
 0x105   :  { %v196_v43 = vpop.xlane.xlu0 %195  ;;  %v198_v28 = vpop.xlane.xlu1 %197 }
 0x106   :  { %2017 = vst [vmem:[#allocation25_spill] sm:$0xff] %v1674_v29  ;;  %2018 = vst [vmem:[#allocation26_spill] sm:$0xff] %v1677_v46  ;;  %v273_v33 = vmul.f32 0.0078125, %v196_v43  ;;  %v399_v37 = vmul.f32 %v1674_v29, %v1674_v29  ;;  %v274_v41 = vmul.f32 0.0078125, %v198_v28  ;;  %v400_v49 = vmul.f32 %v1677_v46, %v1677_v46  ;;  %v2022_v29 = vld [vmem:[#allocation9_spill] sm:$0xff] }
 0x108   :  { %v1684_v52 = vsub.f32 %v1393_v50, %v273_v33  ;;  %509 = vadd.xlane.f32.xlu1 %v398_v47  ;;  %511 = vadd.xlane.f32.xlu0 %v399_v37  ;;  %v1687_v45 = vsub.f32 %v2020_v48, %v274_v41  ;;  %v2024_v50 = vld [vmem:[#allocation10_spill] sm:$0xff] }
 0x109   :  { %v200_v31 = vpop.xlane.xlu0 %199  ;;  %v202_v35 = vpop.xlane.xlu1 %201 }
 0x10a   :  { %2019 = vst [vmem:[#allocation27_spill] sm:$0xff] %v1684_v52  ;;  %2021 = vst [vmem:[#allocation8_spill] sm:$0xff] %v1687_v45  ;;  %v275_v39 = vmul.f32 0.0078125, %v200_v31  ;;  %v401_v43 = vmul.f32 %v1684_v52, %v1684_v52  ;;  %v276_v44 = vmul.f32 0.0078125, %v202_v35  ;;  %v402_v33 = vmul.f32 %v1687_v45, %v1687_v45  ;;  %v2026_v52 = vld [vmem:[#allocation11_spill] sm:$0xff] }
 0x10c   :  { %v1694_v28 = vsub.f32 %v2022_v29, %v275_v39  ;;  %513 = vadd.xlane.f32.xlu1 %v400_v49  ;;  %515 = vadd.xlane.f32.xlu0 %v401_v43  ;;  %v1697_v47 = vsub.f32 %v2024_v50, %v276_v44  ;;  %v2028_v29 = vld [vmem:[#allocation12_spill] sm:$0xff] }
 0x10d   :  { %v204_v37 = vpop.xlane.xlu0 %203  ;;  %v206_v41 = vpop.xlane.xlu1 %205 }
 0x10e   :  { %2023 = vst [vmem:[#allocation9_spill] sm:$0xff] %v1694_v28  ;;  %2025 = vst [vmem:[#allocation10_spill] sm:$0xff] %v1697_v47  ;;  %v277_v48 = vmul.f32 0.0078125, %v204_v37  ;;  %v403_v31 = vmul.f32 %v1694_v28, %v1694_v28  ;;  %v278_v46 = vmul.f32 0.0078125, %v206_v41  ;;  %v404_v44 = vmul.f32 %v1697_v47, %v1697_v47  ;;  %v2030_v28 = vld [vmem:[#allocation13_spill] sm:$0xff] }
 0x110   :  { %v1704_v35 = vsub.f32 %v2026_v52, %v277_v48  ;;  %517 = vadd.xlane.f32.xlu1 %v402_v33  ;;  %519 = vadd.xlane.f32.xlu0 %v403_v31  ;;  %v1707_v49 = vsub.f32 %v2028_v29, %v278_v46  ;;  %v2032_v52 = vld [vmem:[#allocation14_spill] sm:$0xff] }
 0x111   :  { %v208_v39 = vpop.xlane.xlu0 %207  ;;  %v210_v43 = vpop.xlane.xlu1 %209 }
 0x112   :  { %2027 = vst [vmem:[#allocation11_spill] sm:$0xff] %v1704_v35  ;;  %2029 = vst [vmem:[#allocation12_spill] sm:$0xff] %v1707_v49  ;;  %v279_v50 = vmul.f32 0.0078125, %v208_v39  ;;  %v405_v37 = vmul.f32 %v1704_v35, %v1704_v35  ;;  %v280_v45 = vmul.f32 0.0078125, %v210_v43  ;;  %v406_v46 = vmul.f32 %v1707_v49, %v1707_v49  ;;  %v2034_v35 = vld [vmem:[#allocation15_spill] sm:$0xff] }
 0x114   :  { %v1714_v41 = vsub.f32 %v2030_v28, %v279_v50  ;;  %521 = vadd.xlane.f32.xlu1 %v404_v44  ;;  %523 = vadd.xlane.f32.xlu0 %v405_v37  ;;  %v1717_v33 = vsub.f32 %v2032_v52, %v280_v45  ;;  %v2036_v28 = vld [vmem:[#allocation16_spill] sm:$0xff] }
 0x115   :  { %v212_v48 = vpop.xlane.xlu0 %211  ;;  %v214_v31 = vpop.xlane.xlu1 %213 }
 0x116   :  { %2031 = vst [vmem:[#allocation13_spill] sm:$0xff] %v1714_v41  ;;  %2033 = vst [vmem:[#allocation14_spill] sm:$0xff] %v1717_v33  ;;  %v281_v29 = vmul.f32 0.0078125, %v212_v48  ;;  %v407_v39 = vmul.f32 %v1714_v41, %v1714_v41  ;;  %v282_v47 = vmul.f32 0.0078125, %v214_v31  ;;  %v408_v45 = vmul.f32 %v1717_v33, %v1717_v33  ;;  %v2038_v41 = vld [vmem:[#allocation17_spill] sm:$0xff] }
 0x118   :  { %v1724_v43 = vsub.f32 %v2034_v35, %v281_v29  ;;  %525 = vadd.xlane.f32.xlu1 %v406_v46  ;;  %527 = vadd.xlane.f32.xlu0 %v407_v39  ;;  %v1727_v44 = vsub.f32 %v2036_v28, %v282_v47  ;;  %v2040_v35 = vld [vmem:[#allocation18_spill] sm:$0xff] }
 0x119   :  { %v216_v50 = vpop.xlane.xlu0 %215  ;;  %v218_v37 = vpop.xlane.xlu1 %217 }
 0x11a   :  { %2035 = vst [vmem:[#allocation15_spill] sm:$0xff] %v1724_v43  ;;  %2037 = vst [vmem:[#allocation16_spill] sm:$0xff] %v1727_v44  ;;  %v283_v52 = vmul.f32 0.0078125, %v216_v50  ;;  %v409_v48 = vmul.f32 %v1724_v43, %v1724_v43  ;;  %v284_v49 = vmul.f32 0.0078125, %v218_v37  ;;  %v410_v47 = vmul.f32 %v1727_v44, %v1727_v44 }
 0x11c   :  { %v1734_v31 = vsub.f32 %v2038_v41, %v283_v52  ;;  %529 = vadd.xlane.f32.xlu1 %v408_v45  ;;  %531 = vadd.xlane.f32.xlu0 %v409_v48  ;;  %v1737_v46 = vsub.f32 %v2040_v35, %v284_v49  ;;  %v2043_v41 = vld [vmem:[#allocation19_spill] sm:$0xff] }
 0x11d   :  { %v220_v29 = vpop.xlane.xlu0 %219  ;;  %v222_v39 = vpop.xlane.xlu1 %221 }
 0x11e   :  { %2039 = vst [vmem:[#allocation17_spill] sm:$0xff] %v1734_v31  ;;  %2041 = vst [vmem:[#allocation18_spill] sm:$0xff] %v1737_v46  ;;  %v285_v28 = vmul.f32 0.0078125, %v220_v29  ;;  %v411_v50 = vmul.f32 %v1734_v31, %v1734_v31  ;;  %v286_v33 = vmul.f32 0.0078125, %v222_v39  ;;  %v412_v49 = vmul.f32 %v1737_v46, %v1737_v46 }
 0x120   :  { %v1744_v37 = vsub.f32 %v1429_v62, %v285_v28  ;;  %533 = vadd.xlane.f32.xlu1 %v410_v47  ;;  %535 = vadd.xlane.f32.xlu0 %v411_v50  ;;  %v1747_v45 = vsub.f32 %v2043_v41, %v286_v33 }
 0x122   :  { %2042 = vst [vmem:[#allocation28_spill] sm:$0xff] %v1744_v37  ;;  %2044 = vst [vmem:[#allocation19_spill] sm:$0xff] %v1747_v45  ;;  %v413_v52 = vmul.f32 %v1744_v37, %v1744_v37  ;;  %v414_v48 = vmul.f32 %v1747_v45, %v1747_v45 }
 0x124   :  { %537 = vadd.xlane.f32.xlu1 %v412_v49  ;;  %539 = vadd.xlane.f32.xlu0 %v413_v52 }
 0x128   :  { %541 = vadd.xlane.f32.xlu1 %v414_v48 }
 0x135   :  { %v416_v35 = vpop.xlane.xlu0 %415 }
 0x136   :  { %v543_v62 = vmul.f32 0.0078125, %v416_v35 }
 0x138   :  { %v607_v29 = vadd.f32 1e-05, %v543_v62 }
 0x139   :  { %v418_v47 = vpop.xlane.xlu1 %417  ;;  %v420_v39 = vpop.xlane.xlu0 %419 }
 0x13a   :  { %1026 = vrsqrt.f32 %v607_v29  ;;  %v544_v33 = vmul.f32 0.0078125, %v418_v47  ;;  %v545_v28 = vmul.f32 0.0078125, %v420_v39  ;;  %v1758_v29 = vld [vmem:[%s1964_s1] ss:$0 sm:$0xff] }
 0x13c   :  { %v608_v50 = vadd.f32 1e-05, %v544_v33  ;;  %v609_v41 = vadd.f32 1e-05, %v545_v28 }
 0x13d   :  { %v422_v46 = vpop.xlane.xlu1 %421  ;;  %v424_v31 = vpop.xlane.xlu0 %423 }
 0x13e   :  { %1028 = vrsqrt.f32 %v608_v50  ;;  %v546_v37 = vmul.f32 0.0078125, %v422_v46  ;;  %v547_v49 = vmul.f32 0.0078125, %v424_v31 }
 0x13f   :  { %1030 = vrsqrt.f32 %v609_v41 }
 0x140   :  { %v610_v52 = vadd.f32 1e-05, %v546_v37  ;;  %v611_v44 = vadd.f32 1e-05, %v547_v49  ;;  %v1764_v37 = vld [vmem:[%s1965_s2] ss:$0 sm:$0xff] }
 0x141   :  { %v426_v45 = vpop.xlane.xlu1 %425  ;;  %v428_v48 = vpop.xlane.xlu0 %427 }
 0x142   :  { %1032 = vrsqrt.f32 %v610_v52  ;;  %v548_v35 = vmul.f32 0.0078125, %v426_v45  ;;  %v549_v62 = vmul.f32 0.0078125, %v428_v48 }
 0x143   :  { %1034 = vrsqrt.f32 %v611_v44 }
 0x144   :  { %v1027_v43 = vpop.eup %1026  ;;  %v612_v47 = vadd.f32 1e-05, %v548_v35  ;;  %v613_v39 = vadd.f32 1e-05, %v549_v62  ;;  %v2045_v62 = vld [vmem:[#allocation20_spill] sm:$0xff] }
 0x145   :  { %v735_v46 = vmul.f32 %v1027_v43, %v1436_v55  ;;  %v430_v31 = vpop.xlane.xlu1 %429  ;;  %v432_v33 = vpop.xlane.xlu0 %431 }
 0x146   :  { %1036 = vrsqrt.f32 %v612_v47  ;;  %v550_v45 = vmul.f32 0.0078125, %v430_v31  ;;  %v551_v44 = vmul.f32 0.0078125, %v432_v33 }
 0x147   :  { %v805_v28 = vmul.f32 %v1758_v29, %v735_v46  ;;  %1038 = vrsqrt.f32 %v613_v39 }
 0x148   :  { %v1029_v50 = vpop.eup %1028  ;;  %v614_v41 = vadd.f32 1e-05, %v550_v45  ;;  %v615_v49 = vadd.f32 1e-05, %v551_v44 }
 0x149   :  { %v1031_v52 = vpop.eup %1030  ;;  %v875_v48 = vadd.f32 %v1764_v37, %v805_v28  ;;  %v736_v55 = vmul.f32 %v1029_v50, %v1446_v57  ;;  %v434_v43 = vpop.xlane.xlu1 %433 }
 0x14a   :  { %v436_v35 = vpop.xlane.xlu0 %435  ;;  %v737_v27 = vmul.f32 %v1031_v52, %v2045_v62  ;;  %1040 = vrsqrt.f32 %v614_v41  ;;  %v552_v42 = vmul.f32 0.0078125, %v434_v43 }
 0x14b   :  { %v553_v47 = vmul.f32 0.0078125, %v436_v35  ;;  %939 = vst [vmem:[#allocation5] sm:$0xff] %v875_v48  ;;  %v806_v31 = vmul.f32 %v1758_v29, %v736_v55  ;;  %1042 = vrsqrt.f32 %v615_v49 }
 0x14c   :  { %v1033_v39 = vpop.eup %1032  ;;  %v807_v46 = vmul.f32 %v1758_v29, %v737_v27  ;;  %v616_v33 = vadd.f32 1e-05, %v552_v42 }
 0x14d   :  { %v617_v45 = vadd.f32 1e-05, %v553_v47  ;;  %v1035_v44 = vpop.eup %1034  ;;  %v876_v28 = vadd.f32 %v1764_v37, %v806_v31  ;;  %v738_v57 = vmul.f32 %v1033_v39, %v1449_v0  ;;  %v438_v50 = vpop.xlane.xlu1 %437 }
 0x14e   :  { %v440_v25 = vpop.xlane.xlu0 %439  ;;  %v877_v41 = vadd.f32 %v1764_v37, %v807_v46  ;;  %v739_v52 = vmul.f32 %v1035_v44, %v1456_v61  ;;  %1044 = vrsqrt.f32 %v616_v33  ;;  %v554_v48 = vmul.f32 0.0078125, %v438_v50 }
 0x14f   :  { %940 = vst [vmem:[#allocation5 + $0x8] sm:$0xff] %v876_v28  ;;  %v808_v49 = vmul.f32 %v1758_v29, %v738_v57  ;;  %1046 = vrsqrt.f32 %v617_v45  ;;  %v555_v27 = vmul.f32 0.0078125, %v440_v25 }
 0x150   :  { %v1037_v42 = vpop.eup %1036  ;;  %941 = vst [vmem:[#allocation5 + $0x10] sm:$0xff] %v877_v41  ;;  %v809_v55 = vmul.f32 %v1758_v29, %v739_v52  ;;  %v618_v43 = vadd.f32 1e-05, %v554_v48 }
 0x151   :  { %v1039_v35 = vpop.eup %1038  ;;  %v878_v0 = vadd.f32 %v1764_v37, %v808_v49  ;;  %v740_v62 = vmul.f32 %v1037_v42, %v1459_v2  ;;  %v619_v47 = vadd.f32 1e-05, %v555_v27  ;;  %v442_v31 = vpop.xlane.xlu1 %441 }
 0x152   :  { %v444_v61 = vpop.xlane.xlu0 %443  ;;  %v879_v39 = vadd.f32 %v1764_v37, %v809_v55  ;;  %v741_v46 = vmul.f32 %v1039_v35, %v1466_v1  ;;  %1048 = vrsqrt.f32 %v618_v43  ;;  %v556_v33 = vmul.f32 0.0078125, %v442_v31 }
 0x153   :  { %942 = vst [vmem:[#allocation5 + $0x18] sm:$0xff] %v878_v0  ;;  %v810_v25 = vmul.f32 %v1758_v29, %v740_v62  ;;  %1050 = vrsqrt.f32 %v619_v47  ;;  %v557_v45 = vmul.f32 0.0078125, %v444_v61 }
 0x154   :  { %v1041_v44 = vpop.eup %1040  ;;  %943 = vst [vmem:[#allocation5 + $0x20] sm:$0xff] %v879_v39  ;;  %v811_v28 = vmul.f32 %v1758_v29, %v741_v46  ;;  %v620_v57 = vadd.f32 1e-05, %v556_v33 }
 0x155   :  { %v1043_v2 = vpop.eup %1042  ;;  %v880_v50 = vadd.f32 %v1764_v37, %v810_v25  ;;  %v742_v41 = vmul.f32 %v1041_v44, %v1469_v4  ;;  %v621_v52 = vadd.f32 1e-05, %v557_v45  ;;  %v446_v48 = vpop.xlane.xlu1 %445 }
 0x156   :  { %v448_v1 = vpop.xlane.xlu0 %447  ;;  %v881_v49 = vadd.f32 %v1764_v37, %v811_v28  ;;  %v743_v27 = vmul.f32 %v1043_v2, %v1476_v51  ;;  %1052 = vrsqrt.f32 %v620_v57  ;;  %v558_v42 = vmul.f32 0.0078125, %v446_v48 }
 0x157   :  { %944 = vst [vmem:[#allocation5 + $0x28] sm:$0xff] %v880_v50  ;;  %v812_v55 = vmul.f32 %v1758_v29, %v742_v41  ;;  %1054 = vrsqrt.f32 %v621_v52  ;;  %v559_v43 = vmul.f32 0.0078125, %v448_v1 }
 0x158   :  { %v1045_v35 = vpop.eup %1044  ;;  %945 = vst [vmem:[#allocation5 + $0x30] sm:$0xff] %v881_v49  ;;  %v813_v0 = vmul.f32 %v1758_v29, %v743_v27  ;;  %v622_v62 = vadd.f32 1e-05, %v558_v42 }
 0x159   :  { %v1047_v4 = vpop.eup %1046  ;;  %v882_v47 = vadd.f32 %v1764_v37, %v812_v55  ;;  %v744_v31 = vmul.f32 %v1045_v35, %v1479_v6  ;;  %v623_v61 = vadd.f32 1e-05, %v559_v43  ;;  %v450_v39 = vpop.xlane.xlu1 %449 }
 0x15a   :  { %v452_v51 = vpop.xlane.xlu0 %451  ;;  %v883_v46 = vadd.f32 %v1764_v37, %v813_v0  ;;  %v745_v33 = vmul.f32 %v1047_v4, %v1486_v58  ;;  %1056 = vrsqrt.f32 %v622_v62  ;;  %v560_v25 = vmul.f32 0.0078125, %v450_v39 }
 0x15b   :  { %946 = vst [vmem:[#allocation5 + $0x38] sm:$0xff] %v882_v47  ;;  %v814_v45 = vmul.f32 %v1758_v29, %v744_v31  ;;  %1058 = vrsqrt.f32 %v623_v61  ;;  %v561_v44 = vmul.f32 0.0078125, %v452_v51 }
 0x15c   :  { %v1049_v28 = vpop.eup %1048  ;;  %947 = vst [vmem:[#allocation5 + $0x40] sm:$0xff] %v883_v46  ;;  %v815_v57 = vmul.f32 %v1758_v29, %v745_v33  ;;  %v624_v2 = vadd.f32 1e-05, %v560_v25 }
 0x15d   :  { %v1051_v6 = vpop.eup %1050  ;;  %v884_v50 = vadd.f32 %v1764_v37, %v814_v45  ;;  %v746_v41 = vmul.f32 %v1049_v28, %v1489_v8  ;;  %v625_v52 = vadd.f32 1e-05, %v561_v44  ;;  %v454_v48 = vpop.xlane.xlu1 %453 }
 0x15e   :  { %v456_v58 = vpop.xlane.xlu0 %455  ;;  %v885_v1 = vadd.f32 %v1764_v37, %v815_v57  ;;  %v747_v49 = vmul.f32 %v1051_v6, %v1496_v54  ;;  %1060 = vrsqrt.f32 %v624_v2  ;;  %v562_v27 = vmul.f32 0.0078125, %v454_v48 }
 0x15f   :  { %948 = vst [vmem:[#allocation5 + $0x48] sm:$0xff] %v884_v50  ;;  %v816_v42 = vmul.f32 %v1758_v29, %v746_v41  ;;  %1062 = vrsqrt.f32 %v625_v52  ;;  %v563_v55 = vmul.f32 0.0078125, %v456_v58 }
 0x160   :  { %v1053_v43 = vpop.eup %1052  ;;  %949 = vst [vmem:[#allocation5 + $0x50] sm:$0xff] %v885_v1  ;;  %v817_v35 = vmul.f32 %v1758_v29, %v747_v49  ;;  %v626_v0 = vadd.f32 1e-05, %v562_v27 }
 0x161   :  { %v1055_v8 = vpop.eup %1054  ;;  %v886_v62 = vadd.f32 %v1764_v37, %v816_v42  ;;  %v748_v4 = vmul.f32 %v1053_v43, %v1499_v10  ;;  %v627_v47 = vadd.f32 1e-05, %v563_v55  ;;  %v458_v31 = vpop.xlane.xlu1 %457 }
 0x162   :  { %v460_v54 = vpop.xlane.xlu0 %459  ;;  %v887_v61 = vadd.f32 %v1764_v37, %v817_v35  ;;  %v749_v39 = vmul.f32 %v1055_v8, %v1506_v59  ;;  %1064 = vrsqrt.f32 %v626_v0  ;;  %v564_v51 = vmul.f32 0.0078125, %v458_v31 }
 0x163   :  { %950 = vst [vmem:[#allocation5 + $0x58] sm:$0xff] %v886_v62  ;;  %v818_v46 = vmul.f32 %v1758_v29, %v748_v4  ;;  %1066 = vrsqrt.f32 %v627_v47  ;;  %v565_v33 = vmul.f32 0.0078125, %v460_v54 }
 0x164   :  { %v1057_v25 = vpop.eup %1056  ;;  %951 = vst [vmem:[#allocation5 + $0x60] sm:$0xff] %v887_v61  ;;  %v819_v45 = vmul.f32 %v1758_v29, %v749_v39  ;;  %v628_v44 = vadd.f32 1e-05, %v564_v51 }
 0x165   :  { %v1059_v10 = vpop.eup %1058  ;;  %v888_v28 = vadd.f32 %v1764_v37, %v818_v46  ;;  %v750_v57 = vmul.f32 %v1057_v25, %v1509_v12  ;;  %v629_v2 = vadd.f32 1e-05, %v565_v33  ;;  %v462_v6 = vpop.xlane.xlu1 %461 }
 0x166   :  { %v464_v59 = vpop.xlane.xlu0 %463  ;;  %v889_v50 = vadd.f32 %v1764_v37, %v819_v45  ;;  %v751_v41 = vmul.f32 %v1059_v10, %v1516_v53  ;;  %1068 = vrsqrt.f32 %v628_v44  ;;  %v566_v52 = vmul.f32 0.0078125, %v462_v6 }
 0x167   :  { %952 = vst [vmem:[#allocation5 + $0x68] sm:$0xff] %v888_v28  ;;  %v820_v48 = vmul.f32 %v1758_v29, %v750_v57  ;;  %1070 = vrsqrt.f32 %v629_v2  ;;  %v567_v58 = vmul.f32 0.0078125, %v464_v59 }
 0x168   :  { %v1061_v1 = vpop.eup %1060  ;;  %953 = vst [vmem:[#allocation5 + $0x70] sm:$0xff] %v889_v50  ;;  %v821_v49 = vmul.f32 %v1758_v29, %v751_v41  ;;  %v630_v27 = vadd.f32 1e-05, %v566_v52 }
 0x169   :  { %v1063_v12 = vpop.eup %1062  ;;  %v890_v42 = vadd.f32 %v1764_v37, %v820_v48  ;;  %v752_v55 = vmul.f32 %v1061_v1, %v1519_v14  ;;  %v631_v43 = vadd.f32 1e-05, %v567_v58  ;;  %v466_v35 = vpop.xlane.xlu1 %465 }
 0x16a   :  { %v468_v53 = vpop.xlane.xlu0 %467  ;;  %v891_v0 = vadd.f32 %v1764_v37, %v821_v49  ;;  %v753_v8 = vmul.f32 %v1063_v12, %v1526_v60  ;;  %1072 = vrsqrt.f32 %v630_v27  ;;  %v568_v62 = vmul.f32 0.0078125, %v466_v35 }
 0x16b   :  { %954 = vst [vmem:[#allocation5 + $0x78] sm:$0xff] %v890_v42  ;;  %v822_v4 = vmul.f32 %v1758_v29, %v752_v55  ;;  %1074 = vrsqrt.f32 %v631_v43  ;;  %v569_v47 = vmul.f32 0.0078125, %v468_v53 }
 0x16c   :  { %v1065_v31 = vpop.eup %1064  ;;  %955 = vst [vmem:[#allocation5 + $0x80] sm:$0xff] %v891_v0  ;;  %v823_v54 = vmul.f32 %v1758_v29, %v753_v8  ;;  %v632_v61 = vadd.f32 1e-05, %v568_v62 }
 0x16d   :  { %v1067_v14 = vpop.eup %1066  ;;  %v892_v39 = vadd.f32 %v1764_v37, %v822_v4  ;;  %v754_v51 = vmul.f32 %v1065_v31, %v1529_v16  ;;  %v633_v46 = vadd.f32 1e-05, %v569_v47  ;;  %v470_v33 = vpop.xlane.xlu1 %469 }
 0x16e   :  { %v472_v60 = vpop.xlane.xlu0 %471  ;;  %v893_v25 = vadd.f32 %v1764_v37, %v823_v54  ;;  %v755_v45 = vmul.f32 %v1067_v14, %v1536_v56  ;;  %1076 = vrsqrt.f32 %v632_v61  ;;  %v570_v44 = vmul.f32 0.0078125, %v470_v33 }
 0x16f   :  { %956 = vst [vmem:[#allocation5 + $0x88] sm:$0xff] %v892_v39  ;;  %v824_v10 = vmul.f32 %v1758_v29, %v754_v51  ;;  %1078 = vrsqrt.f32 %v633_v46  ;;  %v571_v28 = vmul.f32 0.0078125, %v472_v60 }
 0x170   :  { %v1069_v57 = vpop.eup %1068  ;;  %957 = vst [vmem:[#allocation5 + $0x90] sm:$0xff] %v893_v25  ;;  %v825_v2 = vmul.f32 %v1758_v29, %v755_v45  ;;  %v634_v6 = vadd.f32 1e-05, %v570_v44 }
 0x171   :  { %v1071_v16 = vpop.eup %1070  ;;  %v894_v59 = vadd.f32 %v1764_v37, %v824_v10  ;;  %v756_v50 = vmul.f32 %v1069_v57, %v1539_v18  ;;  %v635_v41 = vadd.f32 1e-05, %v571_v28  ;;  %v474_v52 = vpop.xlane.xlu1 %473 }
 0x172   :  { %v476_v56 = vpop.xlane.xlu0 %475  ;;  %v895_v48 = vadd.f32 %v1764_v37, %v825_v2  ;;  %v757_v58 = vmul.f32 %v1071_v16, %v1546_v3  ;;  %1080 = vrsqrt.f32 %v634_v6  ;;  %v572_v1 = vmul.f32 0.0078125, %v474_v52 }
 0x173   :  { %958 = vst [vmem:[#allocation5 + $0x98] sm:$0xff] %v894_v59  ;;  %v826_v49 = vmul.f32 %v1758_v29, %v756_v50  ;;  %1082 = vrsqrt.f32 %v635_v41  ;;  %v573_v27 = vmul.f32 0.0078125, %v476_v56 }
 0x174   :  { %v1073_v12 = vpop.eup %1072  ;;  %959 = vst [vmem:[#allocation5 + $0xa0] sm:$0xff] %v895_v48  ;;  %v827_v42 = vmul.f32 %v1758_v29, %v757_v58  ;;  %v636_v55 = vadd.f32 1e-05, %v572_v1 }
 0x175   :  { %v1075_v18 = vpop.eup %1074  ;;  %v896_v43 = vadd.f32 %v1764_v37, %v826_v49  ;;  %v758_v35 = vmul.f32 %v1073_v12, %v1549_v20  ;;  %v637_v53 = vadd.f32 1e-05, %v573_v27  ;;  %v478_v0 = vpop.xlane.xlu1 %477 }
 0x176   :  { %v480_v3 = vpop.xlane.xlu0 %479  ;;  %v897_v8 = vadd.f32 %v1764_v37, %v827_v42  ;;  %v759_v62 = vmul.f32 %v1075_v18, %v1556_v5  ;;  %1084 = vrsqrt.f32 %v636_v55  ;;  %v574_v4 = vmul.f32 0.0078125, %v478_v0 }
 0x177   :  { %960 = vst [vmem:[#allocation5 + $0xa8] sm:$0xff] %v896_v43  ;;  %v828_v47 = vmul.f32 %v1758_v29, %v758_v35  ;;  %1086 = vrsqrt.f32 %v637_v53  ;;  %v575_v31 = vmul.f32 0.0078125, %v480_v3 }
 0x178   :  { %v1077_v54 = vpop.eup %1076  ;;  %961 = vst [vmem:[#allocation5 + $0xb0] sm:$0xff] %v897_v8  ;;  %v829_v61 = vmul.f32 %v1758_v29, %v759_v62  ;;  %v638_v14 = vadd.f32 1e-05, %v574_v4 }
 0x179   :  { %v1079_v20 = vpop.eup %1078  ;;  %v898_v39 = vadd.f32 %v1764_v37, %v828_v47  ;;  %v760_v51 = vmul.f32 %v1077_v54, %v1559_v22  ;;  %v639_v46 = vadd.f32 1e-05, %v575_v31  ;;  %v482_v33 = vpop.xlane.xlu1 %481 }
 0x17a   :  { %v484_v5 = vpop.xlane.xlu0 %483  ;;  %v899_v60 = vadd.f32 %v1764_v37, %v829_v61  ;;  %v761_v25 = vmul.f32 %v1079_v20, %v1566_v7  ;;  %1088 = vrsqrt.f32 %v638_v14  ;;  %v576_v45 = vmul.f32 0.0078125, %v482_v33 }
 0x17b   :  { %962 = vst [vmem:[#allocation5 + $0xb8] sm:$0xff] %v898_v39  ;;  %v830_v44 = vmul.f32 %v1758_v29, %v760_v51  ;;  %1090 = vrsqrt.f32 %v639_v46  ;;  %v577_v10 = vmul.f32 0.0078125, %v484_v5 }
 0x17c   :  { %v1081_v28 = vpop.eup %1080  ;;  %963 = vst [vmem:[#allocation5 + $0xc0] sm:$0xff] %v899_v60  ;;  %v831_v57 = vmul.f32 %v1758_v29, %v761_v25  ;;  %v640_v2 = vadd.f32 1e-05, %v576_v45 }
 0x17d   :  { %v1083_v22 = vpop.eup %1082  ;;  %v900_v6 = vadd.f32 %v1764_v37, %v830_v44  ;;  %v762_v16 = vmul.f32 %v1081_v28, %v1569_v24  ;;  %v641_v59 = vadd.f32 1e-05, %v577_v10  ;;  %v486_v50 = vpop.xlane.xlu1 %485 }
 0x17e   :  { %v488_v7 = vpop.xlane.xlu0 %487  ;;  %v901_v41 = vadd.f32 %v1764_v37, %v831_v57  ;;  %v763_v52 = vmul.f32 %v1083_v22, %v1576_v9  ;;  %1092 = vrsqrt.f32 %v640_v2  ;;  %v578_v56 = vmul.f32 0.0078125, %v486_v50 }
 0x17f   :  { %964 = vst [vmem:[#allocation5 + $0xc8] sm:$0xff] %v900_v6  ;;  %v832_v48 = vmul.f32 %v1758_v29, %v762_v16  ;;  %1094 = vrsqrt.f32 %v641_v59  ;;  %v579_v58 = vmul.f32 0.0078125, %v488_v7 }
 0x180   :  { %v1085_v1 = vpop.eup %1084  ;;  %965 = vst [vmem:[#allocation5 + $0xd0] sm:$0xff] %v901_v41  ;;  %v833_v49 = vmul.f32 %v1758_v29, %v763_v52  ;;  %v642_v27 = vadd.f32 1e-05, %v578_v56 }
 0x181   :  { %v1087_v24 = vpop.eup %1086  ;;  %v902_v12 = vadd.f32 %v1764_v37, %v832_v48  ;;  %v764_v42 = vmul.f32 %v1085_v1, %v1579_v26  ;;  %v643_v55 = vadd.f32 1e-05, %v579_v58  ;;  %v490_v18 = vpop.xlane.xlu1 %489 }
 0x182   :  { %v492_v9 = vpop.xlane.xlu0 %491  ;;  %v903_v43 = vadd.f32 %v1764_v37, %v833_v49  ;;  %v765_v35 = vmul.f32 %v1087_v24, %v1584_v11  ;;  %1096 = vrsqrt.f32 %v642_v27  ;;  %v580_v53 = vmul.f32 0.0078125, %v490_v18 }
 0x183   :  { %966 = vst [vmem:[#allocation5 + $0xd8] sm:$0xff] %v902_v12  ;;  %v834_v0 = vmul.f32 %v1758_v29, %v764_v42  ;;  %1098 = vrsqrt.f32 %v643_v55  ;;  %v581_v3 = vmul.f32 0.0078125, %v492_v9 }
 0x184   :  { %v1089_v8 = vpop.eup %1088  ;;  %967 = vst [vmem:[#allocation5 + $0xe0] sm:$0xff] %v903_v43  ;;  %v835_v62 = vmul.f32 %v1758_v29, %v765_v35  ;;  %v644_v4 = vadd.f32 1e-05, %v580_v53 }
 0x185   :  { %v1091_v26 = vpop.eup %1090  ;;  %v904_v47 = vadd.f32 %v1764_v37, %v834_v0  ;;  %v766_v31 = vmul.f32 %v1089_v8, %v1587_v63  ;;  %v645_v54 = vadd.f32 1e-05, %v581_v3  ;;  %v494_v61 = vpop.xlane.xlu1 %493 }
 0x186   :  { %v496_v11 = vpop.xlane.xlu0 %495  ;;  %v905_v14 = vadd.f32 %v1764_v37, %v835_v62  ;;  %v767_v20 = vmul.f32 %v1091_v26, %v1594_v13  ;;  %1100 = vrsqrt.f32 %v644_v4  ;;  %v582_v39 = vmul.f32 0.0078125, %v494_v61 }
 0x187   :  { %968 = vst [vmem:[#allocation5 + $0xe8] sm:$0xff] %v904_v47  ;;  %v836_v51 = vmul.f32 %v1758_v29, %v766_v31  ;;  %1102 = vrsqrt.f32 %v645_v54  ;;  %v583_v46 = vmul.f32 0.0078125, %v496_v11 }
 0x188   :  { %v1093_v33 = vpop.eup %1092  ;;  %969 = vst [vmem:[#allocation5 + $0xf0] sm:$0xff] %v905_v14  ;;  %v837_v5 = vmul.f32 %v1758_v29, %v767_v20  ;;  %v646_v60 = vadd.f32 1e-05, %v582_v39 }
 0x189   :  { %v1095_v63 = vpop.eup %1094  ;;  %v906_v25 = vadd.f32 %v1764_v37, %v836_v51  ;;  %v768_v45 = vmul.f32 %v1093_v33, %v1597_v30  ;;  %v647_v44 = vadd.f32 1e-05, %v583_v46  ;;  %v498_v10 = vpop.xlane.xlu1 %497 }
 0x18a   :  { %v500_v13 = vpop.xlane.xlu0 %499  ;;  %v907_v28 = vadd.f32 %v1764_v37, %v837_v5  ;;  %v769_v57 = vmul.f32 %v1095_v63, %v1604_v15  ;;  %1104 = vrsqrt.f32 %v646_v60  ;;  %v584_v2 = vmul.f32 0.0078125, %v498_v10 }
 0x18b   :  { %970 = vst [vmem:[#allocation5 + $0xf8] sm:$0xff] %v906_v25  ;;  %v838_v22 = vmul.f32 %v1758_v29, %v768_v45  ;;  %1106 = vrsqrt.f32 %v647_v44  ;;  %v585_v6 = vmul.f32 0.0078125, %v500_v13 }
 0x18c   :  { %v1097_v16 = vpop.eup %1096  ;;  %971 = vst [vmem:[#allocation5 + $0x100] sm:$0xff] %v907_v28  ;;  %v839_v59 = vmul.f32 %v1758_v29, %v769_v57  ;;  %v648_v50 = vadd.f32 1e-05, %v584_v2 }
 0x18d   :  { %v1099_v30 = vpop.eup %1098  ;;  %v908_v7 = vadd.f32 %v1764_v37, %v838_v22  ;;  %v770_v41 = vmul.f32 %v1097_v16, %v1607_v32  ;;  %v649_v52 = vadd.f32 1e-05, %v585_v6  ;;  %v502_v56 = vpop.xlane.xlu1 %501 }
 0x18e   :  { %v504_v15 = vpop.xlane.xlu0 %503  ;;  %v909_v48 = vadd.f32 %v1764_v37, %v839_v59  ;;  %v771_v58 = vmul.f32 %v1099_v30, %v1614_v17  ;;  %1108 = vrsqrt.f32 %v648_v50  ;;  %v586_v1 = vmul.f32 0.0078125, %v502_v56 }
 0x18f   :  { %972 = vst [vmem:[#allocation5 + $0x108] sm:$0xff] %v908_v7  ;;  %v840_v49 = vmul.f32 %v1758_v29, %v770_v41  ;;  %1110 = vrsqrt.f32 %v649_v52  ;;  %v587_v27 = vmul.f32 0.0078125, %v504_v15  ;;  %v2046_v41 = vld [vmem:[#allocation21_spill] sm:$0xff] }
 0x190   :  { %v1101_v24 = vpop.eup %1100  ;;  %973 = vst [vmem:[#allocation5 + $0x110] sm:$0xff] %v909_v48  ;;  %v841_v12 = vmul.f32 %v1758_v29, %v771_v58  ;;  %v650_v42 = vadd.f32 1e-05, %v586_v1 }
 0x191   :  { %v1103_v32 = vpop.eup %1102  ;;  %v910_v55 = vadd.f32 %v1764_v37, %v840_v49  ;;  %v772_v18 = vmul.f32 %v1101_v24, %v1617_v34  ;;  %v651_v9 = vadd.f32 1e-05, %v587_v27  ;;  %v506_v43 = vpop.xlane.xlu1 %505  ;;  %v2047_v24 = vld [vmem:[#allocation22_spill] sm:$0xff] }
 0x192   :  { %v508_v17 = vpop.xlane.xlu0 %507  ;;  %v911_v35 = vadd.f32 %v1764_v37, %v841_v12  ;;  %v773_v53 = vmul.f32 %v1103_v32, %v1624_v19  ;;  %1112 = vrsqrt.f32 %v650_v42  ;;  %v588_v0 = vmul.f32 0.0078125, %v506_v43 }
 0x193   :  { %974 = vst [vmem:[#allocation5 + $0x118] sm:$0xff] %v910_v55  ;;  %v842_v3 = vmul.f32 %v1758_v29, %v772_v18  ;;  %1114 = vrsqrt.f32 %v651_v9  ;;  %v589_v8 = vmul.f32 0.0078125, %v508_v17  ;;  %v2048_v9 = vld [vmem:[#allocation23_spill] sm:$0xff] }
 0x194   :  { %v1105_v62 = vpop.eup %1104  ;;  %975 = vst [vmem:[#allocation5 + $0x120] sm:$0xff] %v911_v35  ;;  %v843_v4 = vmul.f32 %v1758_v29, %v773_v53  ;;  %v652_v26 = vadd.f32 1e-05, %v588_v0 }
 0x195   :  { %v1107_v34 = vpop.eup %1106  ;;  %v912_v47 = vadd.f32 %v1764_v37, %v842_v3  ;;  %v774_v31 = vmul.f32 %v1105_v62, %v1627_v36  ;;  %v653_v54 = vadd.f32 1e-05, %v589_v8  ;;  %v510_v61 = vpop.xlane.xlu1 %509 }
 0x196   :  { %v512_v19 = vpop.xlane.xlu0 %511  ;;  %v913_v11 = vadd.f32 %v1764_v37, %v843_v4  ;;  %v775_v14 = vmul.f32 %v1107_v34, %v1634_v21  ;;  %1116 = vrsqrt.f32 %v652_v26  ;;  %v590_v20 = vmul.f32 0.0078125, %v510_v61  ;;  %v2049_v26 = vld [vmem:[#allocation24_spill] sm:$0xff] }
 0x197   :  { %976 = vst [vmem:[#allocation5 + $0x128] sm:$0xff] %v912_v47  ;;  %v844_v39 = vmul.f32 %v1758_v29, %v774_v31  ;;  %1118 = vrsqrt.f32 %v653_v54  ;;  %v591_v51 = vmul.f32 0.0078125, %v512_v19  ;;  %v2050_v19 = vld [vmem:[#allocation25_spill] sm:$0xff] }
 0x198   :  { %v1109_v46 = vpop.eup %1108  ;;  %977 = vst [vmem:[#allocation5 + $0x130] sm:$0xff] %v913_v11  ;;  %v845_v33 = vmul.f32 %v1758_v29, %v775_v14  ;;  %v654_v5 = vadd.f32 1e-05, %v590_v20 }
 0x199   :  { %v1111_v36 = vpop.eup %1110  ;;  %v914_v60 = vadd.f32 %v1764_v37, %v844_v39  ;;  %v776_v63 = vmul.f32 %v1109_v46, %v1637_v38  ;;  %v655_v25 = vadd.f32 1e-05, %v591_v51  ;;  %v514_v45 = vpop.xlane.xlu1 %513 }
 0x19a   :  { %v516_v21 = vpop.xlane.xlu0 %515  ;;  %v915_v44 = vadd.f32 %v1764_v37, %v845_v33  ;;  %v777_v10 = vmul.f32 %v1111_v36, %v1644_v23  ;;  %1120 = vrsqrt.f32 %v654_v5  ;;  %v592_v13 = vmul.f32 0.0078125, %v514_v45 }
 0x19b   :  { %978 = vst [vmem:[#allocation5 + $0x138] sm:$0xff] %v914_v60  ;;  %v846_v28 = vmul.f32 %v1758_v29, %v776_v63  ;;  %1122 = vrsqrt.f32 %v655_v25  ;;  %v593_v57 = vmul.f32 0.0078125, %v516_v21  ;;  %v2051_v60 = vld [vmem:[#allocation26_spill] sm:$0xff] }
 0x19c   :  { %v1113_v2 = vpop.eup %1112  ;;  %979 = vst [vmem:[#allocation5 + $0x140] sm:$0xff] %v915_v44  ;;  %v847_v22 = vmul.f32 %v1758_v29, %v777_v10  ;;  %v656_v6 = vadd.f32 1e-05, %v592_v13  ;;  %v2052_v10 = vld [vmem:[#allocation27_spill] sm:$0xff] }
 0x19d   :  { %v1115_v38 = vpop.eup %1114  ;;  %v916_v16 = vadd.f32 %v1764_v37, %v846_v28  ;;  %v778_v59 = vmul.f32 %v1113_v2, %v1647_v40  ;;  %v657_v50 = vadd.f32 1e-05, %v593_v57  ;;  %v518_v30 = vpop.xlane.xlu1 %517 }
 0x19e   :  { %v520_v23 = vpop.xlane.xlu0 %519  ;;  %v917_v7 = vadd.f32 %v1764_v37, %v847_v22  ;;  %v779_v52 = vmul.f32 %v1115_v38, %v2046_v41  ;;  %1124 = vrsqrt.f32 %v656_v6  ;;  %v594_v56 = vmul.f32 0.0078125, %v518_v30 }
 0x19f   :  { %980 = vst [vmem:[#allocation5 + $0x148] sm:$0xff] %v916_v16  ;;  %v848_v15 = vmul.f32 %v1758_v29, %v778_v59  ;;  %1126 = vrsqrt.f32 %v657_v50  ;;  %v595_v48 = vmul.f32 0.0078125, %v520_v23  ;;  %v2053_v50 = vld [vmem:[#allocation8_spill] sm:$0xff] }
 0x1a0   :  { %v1117_v58 = vpop.eup %1116  ;;  %981 = vst [vmem:[#allocation5 + $0x150] sm:$0xff] %v917_v7  ;;  %v849_v1 = vmul.f32 %v1758_v29, %v779_v52  ;;  %v658_v49 = vadd.f32 1e-05, %v594_v56  ;;  %v2054_v56 = vld [vmem:[#allocation9_spill] sm:$0xff] }
 0x1a1   :  { %v1119_v40 = vpop.eup %1118  ;;  %v918_v27 = vadd.f32 %v1764_v37, %v848_v15  ;;  %v780_v12 = vmul.f32 %v1117_v58, %v2047_v24  ;;  %v659_v42 = vadd.f32 1e-05, %v595_v48  ;;  %v522_v32 = vpop.xlane.xlu1 %521 }
 0x1a2   :  { %v524_v55 = vpop.xlane.xlu0 %523  ;;  %v919_v18 = vadd.f32 %v1764_v37, %v849_v1  ;;  %v781_v43 = vmul.f32 %v1119_v40, %v2048_v9  ;;  %1128 = vrsqrt.f32 %v658_v49  ;;  %v596_v17 = vmul.f32 0.0078125, %v522_v32 }
 0x1a3   :  { %982 = vst [vmem:[#allocation5 + $0x158] sm:$0xff] %v918_v27  ;;  %v850_v35 = vmul.f32 %v1758_v29, %v780_v12  ;;  %1130 = vrsqrt.f32 %v659_v42  ;;  %v597_v53 = vmul.f32 0.0078125, %v524_v55  ;;  %v2055_v42 = vld [vmem:[#allocation10_spill] sm:$0xff] }
 0x1a4   :  { %v1121_v0 = vpop.eup %1120  ;;  %983 = vst [vmem:[#allocation5 + $0x160] sm:$0xff] %v919_v18  ;;  %v851_v3 = vmul.f32 %v1758_v29, %v781_v43  ;;  %v660_v8 = vadd.f32 1e-05, %v596_v17  ;;  %v2056_v17 = vld [vmem:[#allocation11_spill] sm:$0xff] }
 0x1a5   :  { %v1123_v62 = vpop.eup %1122  ;;  %v920_v4 = vadd.f32 %v1764_v37, %v850_v35  ;;  %v782_v34 = vmul.f32 %v1121_v0, %v2049_v26  ;;  %v661_v47 = vadd.f32 1e-05, %v597_v53  ;;  %v526_v31 = vpop.xlane.xlu1 %525 }
 0x1a6   :  { %v528_v54 = vpop.xlane.xlu0 %527  ;;  %v921_v61 = vadd.f32 %v1764_v37, %v851_v3  ;;  %v783_v11 = vmul.f32 %v1123_v62, %v2050_v19  ;;  %1132 = vrsqrt.f32 %v660_v8  ;;  %v598_v14 = vmul.f32 0.0078125, %v526_v31 }
 0x1a7   :  { %984 = vst [vmem:[#allocation5 + $0x168] sm:$0xff] %v920_v4  ;;  %v852_v20 = vmul.f32 %v1758_v29, %v782_v34  ;;  %1134 = vrsqrt.f32 %v661_v47  ;;  %v599_v39 = vmul.f32 0.0078125, %v528_v54  ;;  %v2057_v47 = vld [vmem:[#allocation12_spill] sm:$0xff] }
 0x1a8   :  { %v1125_v51 = vpop.eup %1124  ;;  %985 = vst [vmem:[#allocation5 + $0x170] sm:$0xff] %v921_v61  ;;  %v853_v46 = vmul.f32 %v1758_v29, %v783_v11  ;;  %v662_v33 = vadd.f32 1e-05, %v598_v14  ;;  %v2058_v11 = vld [vmem:[#allocation13_spill] sm:$0xff] }
 0x1a9   :  { %v1127_v5 = vpop.eup %1126  ;;  %v922_v36 = vadd.f32 %v1764_v37, %v852_v20  ;;  %v784_v63 = vmul.f32 %v1125_v51, %v2051_v60  ;;  %v663_v25 = vadd.f32 1e-05, %v599_v39  ;;  %v530_v45 = vpop.xlane.xlu1 %529 }
 0x1aa   :  { %v532_v21 = vpop.xlane.xlu0 %531  ;;  %v923_v44 = vadd.f32 %v1764_v37, %v853_v46  ;;  %v785_v13 = vmul.f32 %v1127_v5, %v2052_v10  ;;  %1136 = vrsqrt.f32 %v662_v33  ;;  %v600_v28 = vmul.f32 0.0078125, %v530_v45  ;;  %v1154_v46 = vld [vmem:[%s1964_s1] ss:$0 sm:$0xff] }
 0x1ab   :  { %986 = vst [vmem:[#allocation5 + $0x178] sm:$0xff] %v922_v36  ;;  %v854_v57 = vmul.f32 %v1758_v29, %v784_v63  ;;  %1138 = vrsqrt.f32 %v663_v25  ;;  %v601_v2 = vmul.f32 0.0078125, %v532_v21  ;;  %v2059_v63 = vld [vmem:[#allocation14_spill] sm:$0xff]  ;;  %v2060_v21 = vld [vmem:[#allocation15_spill] sm:$0xff] }
 0x1ac   :  { %v1129_v22 = vpop.eup %1128  ;;  %987 = vst [vmem:[#allocation5 + $0x180] sm:$0xff] %v923_v44  ;;  %v855_v6 = vmul.f32 %v1758_v29, %v785_v13  ;;  %v664_v38 = vadd.f32 1e-05, %v600_v28 }
 0x1ad   :  { %v1131_v16 = vpop.eup %1130  ;;  %v924_v59 = vadd.f32 %v1764_v37, %v854_v57  ;;  %v786_v30 = vmul.f32 %v1129_v22, %v2053_v50  ;;  %v665_v23 = vadd.f32 1e-05, %v601_v2  ;;  %v534_v7 = vpop.xlane.xlu1 %533  ;;  %v1155_v57 = vld [vmem:[%s1965_s2] ss:$0 sm:$0xff]  ;;  %s1207_s2 = smov [#allocation5]  }
 0x1ae   :  { %v536_v41 = vpop.xlane.xlu0 %535  ;;  %v925_v52 = vadd.f32 %v1764_v37, %v855_v6  ;;  %v787_v15 = vmul.f32 %v1131_v16, %v2054_v56  ;;  %1140 = vrsqrt.f32 %v664_v38  ;;  %v602_v48 = vmul.f32 0.0078125, %v534_v7  ;;  %v2061_v22 = vld [vmem:[#allocation16_spill] sm:$0xff]  ;;  %v2062_v16 = vld [vmem:[#allocation17_spill] sm:$0xff]  ;;  %s1008_s5 = sshll.u32 %s1207_s2, 4  ;;  %s1009_s5 = int_to_ptr.vmem [resolvable:$true] %s1008_s5 }
 0x1af   :  { %988 = vst [vmem:[#allocation5 + $0x188] sm:$0xff] %v924_v59  ;;  %v856_v58 = vmul.f32 %v1758_v29, %v786_v30  ;;  %1142 = vrsqrt.f32 %v665_v23  ;;  %v603_v1 = vmul.f32 0.0078125, %v536_v41  ;;  %v2063_v41 = vld [vmem:[#allocation18_spill] sm:$0xff]  ;;  %s1178_s6 = scalar_lea.vmem %s1009_s5, 8192  ;;  %p1183_p9 = scmp.lt.s32.totalorder %s1009_s5, %s1009_s5 }
 0x1b0   :  { %v1133_v49 = vpop.eup %1132  ;;  %989 = vst [vmem:[#allocation5 + $0x190] sm:$0xff] %v925_v52  ;;  %v857_v40 = vmul.f32 %v1758_v29, %v787_v15  ;;  %v666_v27 = vadd.f32 1e-05, %v602_v48  ;;  %v2064_v15 = vld [vmem:[#allocation28_spill] sm:$0xff]  ;;  %p1179_p8 = scmp.ne.s32.totalorder %s1009_s5, %s1178_s6  ;;  %p1184_p10 = scmp.lt.s32.totalorder %s1178_s6, %s1178_s6 }
 0x1b1   :  { %v1135_v24 = vpop.eup %1134  ;;  %v926_v12 = vadd.f32 %v1764_v37, %v856_v58  ;;  %v788_v32 = vmul.f32 %v1133_v49, %v2055_v42  ;;  %v667_v55 = vadd.f32 1e-05, %v603_v1  ;;  %v538_v18 = vpop.xlane.xlu1 %537 }
 0x1b2   :  { %v540_v9 = vpop.xlane.xlu0 %539  ;;  %v927_v43 = vadd.f32 %v1764_v37, %v857_v40  ;;  %v789_v35 = vmul.f32 %v1135_v24, %v2056_v17  ;;  %1144 = vrsqrt.f32 %v666_v27  ;;  %v604_v53 = vmul.f32 0.0078125, %v538_v18  ;;  %v2065_v27 = vld [vmem:[#allocation19_spill] sm:$0xff]  ;;  %p1185_p11 = por %p1184_p10, %p1183_p9 }
 0x1b3   :  { %990 = vst [vmem:[#allocation5 + $0x198] sm:$0xff] %v926_v12  ;;  %v858_v0 = vmul.f32 %v1758_v29, %v788_v32  ;;  %1146 = vrsqrt.f32 %v667_v55  ;;  %v605_v3 = vmul.f32 0.0078125, %v540_v9 }
 0x1b4   :  { %v1137_v8 = vpop.eup %1136  ;;  %991 = vst [vmem:[#allocation5 + $0x1a0] sm:$0xff] %v927_v43  ;;  %v859_v62 = vmul.f32 %v1758_v29, %v789_v35  ;;  %v668_v4 = vadd.f32 1e-05, %v604_v53  ;;  %p1186_p12 = pnand %p1185_p11, %p1179_p8 }
 0x1b5   :  { %v1139_v26 = vpop.eup %1138  ;;  %v928_v34 = vadd.f32 %v1764_v37, %v858_v0  ;;  %v790_v31 = vmul.f32 %v1137_v8, %v2057_v47  ;;  %v669_v54 = vadd.f32 1e-05, %v605_v3  ;;  %v542_v61 = vpop.xlane.xlu1 %541 }
 0x1b6   :  { %v929_v19 = vadd.f32 %v1764_v37, %v859_v62  ;;  %v791_v14 = vmul.f32 %v1139_v26, %v2058_v11  ;;  %1148 = vrsqrt.f32 %v668_v4  ;;  %v606_v20 = vmul.f32 0.0078125, %v542_v61 }
 0x1b7   :  { %992 = vst [vmem:[#allocation5 + $0x1a8] sm:$0xff] %v928_v34  ;;  %v860_v39 = vmul.f32 %v1758_v29, %v790_v31  ;;  %1150 = vrsqrt.f32 %v669_v54 }
 0x1b8   :  { %v1141_v51 = vpop.eup %1140  ;;  %993 = vst [vmem:[#allocation5 + $0x1b0] sm:$0xff] %v929_v19  ;;  %v861_v33 = vmul.f32 %v1154_v46, %v791_v14  ;;  %v670_v5 = vadd.f32 1e-05, %v606_v20 }
 0x1b9   :  { %v1143_v36 = vpop.eup %1142  ;;  %v930_v60 = vadd.f32 %v1764_v37, %v860_v39  ;;  %v792_v25 = vmul.f32 %v1141_v51, %v2059_v63 }
 0x1ba   :  { %v931_v45 = vadd.f32 %v1764_v37, %v861_v33  ;;  %v793_v44 = vmul.f32 %v1143_v36, %v2060_v21  ;;  %1152 = vrsqrt.f32 %v670_v5 }
 0x1bb   :  { %994 = vst [vmem:[#allocation5 + $0x1b8] sm:$0xff] %v930_v60  ;;  %v862_v29 = vmul.f32 %v1154_v46, %v792_v25 }
 0x1bc   :  { %v1145_v10 = vpop.eup %1144  ;;  %995 = vst [vmem:[#allocation5 + $0x1c0] sm:$0xff] %v931_v45  ;;  %v863_v13 = vmul.f32 %v1154_v46, %v793_v44 }
 0x1bd   :  { %v1147_v28 = vpop.eup %1146  ;;  %v932_v2 = vadd.f32 %v1155_v57, %v862_v29  ;;  %v794_v6 = vmul.f32 %v1145_v10, %v2061_v22 }
 0x1be   :  { %v933_v38 = vadd.f32 %v1155_v57, %v863_v13  ;;  %v795_v59 = vmul.f32 %v1147_v28, %v2062_v16 }
 0x1bf   :  { %996 = vst [vmem:[#allocation5 + $0x1c8] sm:$0xff] %v932_v2  ;;  %v864_v37 = vmul.f32 %v1154_v46, %v794_v6 }
 0x1c0   :  { %v1149_v50 = vpop.eup %1148  ;;  %997 = vst [vmem:[#allocation5 + $0x1d0] sm:$0xff] %v933_v38  ;;  %v865_v30 = vmul.f32 %v1154_v46, %v795_v59 }
 0x1c1   :  { %v1151_v23 = vpop.eup %1150  ;;  %v934_v7 = vadd.f32 %v1155_v57, %v864_v37  ;;  %v796_v52 = vmul.f32 %v1149_v50, %v2063_v41 }
 0x1c2   :  { %v935_v56 = vadd.f32 %v1155_v57, %v865_v30  ;;  %v797_v48 = vmul.f32 %v1151_v23, %v2064_v15 }
 0x1c3   :  { %998 = vst [vmem:[#allocation5 + $0x1d8] sm:$0xff] %v934_v7  ;;  %v866_v58 = vmul.f32 %v1154_v46, %v796_v52 }
 0x1c4   :  { %v1153_v1 = vpop.eup %1152  ;;  %999 = vst [vmem:[#allocation5 + $0x1e0] sm:$0xff] %v935_v56  ;;  %v867_v49 = vmul.f32 %v1154_v46, %v797_v48 }
 0x1c5   :  { %v936_v40 = vadd.f32 %v1155_v57, %v866_v58  ;;  %v798_v24 = vmul.f32 %v1153_v1, %v2065_v27 }
 0x1c6   :  { %v937_v12 = vadd.f32 %v1155_v57, %v867_v49 }
 0x1c7   :  { %1000 = vst [vmem:[#allocation5 + $0x1e8] sm:$0xff] %v936_v40  ;;  %v868_v42 = vmul.f32 %v1154_v46, %v798_v24 }
 0x1c8   :  { %1001 = vst [vmem:[#allocation5 + $0x1f0] sm:$0xff] %v937_v12 }
 0x1c9   :  { %v938_v32 = vadd.f32 %v1155_v57, %v868_v42 }
 0x1cb   :  { %1002 = vst [vmem:[#allocation5 + $0x1f8] sm:$0xff] %v938_v32 }
 0x1cc   :  { %1189 = shalt.err (!%p1186_p12)
}
 0x1cd   :  { %s1190_s9 = scalar_lea.hbm %s1966_s3, 8192 }
 0x1ce   :  { %p1191_p13 = scmp.ne.s32.totalorder %s1966_s3, %s1190_s9  ;;  %p1194_p0 = scmp.lt.u32.totalorder %s1190_s9, %s1966_s3 }
 0x1d0   :  { %p1196_p1 = pnand %p1194_p0, %p1191_p13 }
 0x1d2   :  { %1199 = shalt.err (!%p1196_p1)
}
 0x1d3   :  { %1014 = dma.vmem_to_hbm [thread:$0]  %s1009_s5, 8192, %s1966_s3, [#allocation4], %s1205_s22, %s1205_s22, %s1206_s23  }
 0x1d4   :  { %1202 = dma.done.wait [#allocation4], 8192  }
 0x1d5   :  { %1203 = vsyncadd [#allocation4], 4294959104 }
 0x1d6   :  { %1018 = vsyncpa [#allocation3], 1 }
 0x1d7   :  { %1019 = vsyncpa [#allocation4], 1 }

</bundles_post_ra>
